<compile_context>
chip_gen: v5e
topology: v5e:2x2
jax: 0.10.0
libtpu: 0.0.40
codegen_flags: <defaults>
</compile_context>

<pallas_src>
import functools

import jax
import jax.numpy as jnp
from jax.experimental import pallas as pl
from jax.experimental.pallas import tpu as pltpu

LANE = 128


def _round_up(x, m):
    return (x + m - 1) // m * m


def _pad2d(a, rows, cols):
    r, c = a.shape
    return jnp.pad(a, ((0, rows - r), (0, cols - c)))


def _vmem_budget_bytes():
    """Generation-aware VMEM budget (v7x: 64 MiB/TC, v5e/v6e: 128 MiB)."""
    cap = None
    try:
        cap = getattr(pltpu.get_tpu_info(), "vmem_capacity_bytes", None)
    except Exception:
        cap = None
    if not cap:
        cap = 64 * 1024 * 1024            # conservative: safe on every gen
    # ~20% headroom for compiler scratch; never request more than 100 MiB.
    return min(int(cap) * 4 // 5, 100 * 1024 * 1024)


def _plan_tiling(n, tm_req, tk_req):
    """Pick (n_pad, tm, tk) with tm | n_pad, tk | n_pad, tm % 8 == 0 and
    tk % 128 == 0, shrinking the requested tiles for small graphs."""
    for t in (tm_req, tk_req):
        assert t % LANE == 0 and (t & (t - 1)) == 0, "tiles: power-of-two * 128"
    # Row tile: shrink until it fits the lane-padded problem, then pad N to it.
    tm = tm_req
    while tm > LANE and tm > _round_up(n, LANE):
        tm //= 2
    n_pad = _round_up(n, tm)
    # Reduction tile: largest power-of-two*128 <= tk_req that divides n_pad.
    tk = tk_req
    while tk > tm and n_pad % tk != 0:
        tk //= 2
    tk = min(tk, n_pad)
    # Keep >= 2 row tiles when possible so "parallel" spans both v7x TCs.
    while tm > LANE and n_pad // tm < 2:
        tm //= 2
    return n_pad, tm, tk


# ------------------------------ Pallas kernels ------------------------------

def _xw_kernel(x_ref, w_ref, d_ref, out_ref):
    """Row tile of the scaled feature transform  (X @ W) * d^{-1/2}[:, None]."""
    xw = jnp.dot(x_ref[...], w_ref[...], preferred_element_type=jnp.float32)
    out_ref[...] = (xw * d_ref[...]).astype(out_ref.dtype)


def _aggregate_kernel(a_ref, xw_ref, d_ref, b_ref, out_ref, acc_ref,
                      *, tk, xw_resident, apply_relu):
    """One (row-tile, k-tile) step of  d^{-1/2} * ((A+I) @ XW_scaled) + b."""
    k = pl.program_id(1)

    @pl.when(k == 0)
    def _():
        acc_ref[...] = jnp.zeros_like(acc_ref)

    if xw_resident:
        start = pl.multiple_of(k * tk, tk)
        xw_blk = xw_ref[pl.ds(start, tk), :]       # slice the VMEM-resident XW
    else:
        xw_blk = xw_ref[...]                       # streamed (tk, fout) tile

    acc_ref[...] += jnp.dot(a_ref[...], xw_blk,
                            preferred_element_type=jnp.float32)

    @pl.when(k == pl.num_programs(1) - 1)
    def _():
        d = d_ref[...]                             # (tm,1) f32; 0 on padded rows
        h = acc_ref[...] * d + b_ref[...]          # left D^-1/2 + bias (VPU)
        if apply_relu:
            h = jnp.maximum(h, 0.0)
        h = jnp.where(d > 0.0, h, 0.0)             # keep padded rows exactly 0
        out_ref[...] = h.astype(out_ref.dtype)


# ------------------------------ layer wrappers ------------------------------

def _feature_transform(x_pad, w, d_pad, *, compute_dtype,
                       row_tile_max, row_tile_min, vmem_limit):
    """XW_scaled = (X @ W) * d^{-1/2}, row-tiled; W stays resident in VMEM."""
    n_pad, fin_pad = x_pad.shape
    fout_pad = _round_up(w.shape[1], LANE)
    cbytes = jnp.dtype(compute_dtype).itemsize

    # Large streaming row tile; shrink only if double-buffered X/out tiles plus
    # the resident W would blow the VMEM budget.
    tm_x = row_tile_max
    while tm_x > row_tile_min and (
            (2 * tm_x * (fin_pad + fout_pad) + 2 * fin_pad * fout_pad) * cbytes
            > (vmem_limit * 9) // 10):
        tm_x //= 2
    if n_pad % tm_x != 0:
        tm_x = row_tile_min
    # TODO(synk): tile fin_pad as well if a single W slab ever exceeds VMEM.

    w_pad = _pad2d(w.astype(compute_dtype), fin_pad, fout_pad)
    return pl.pallas_call(
        _xw_kernel,
        grid=(n_pad // tm_x,),
        in_specs=[
            pl.BlockSpec((tm_x, fin_pad), lambda i: (i, 0)),       # X rows
            pl.BlockSpec((fin_pad, fout_pad), lambda i: (0, 0)),   # W (resident)
            pl.BlockSpec((tm_x, 1), lambda i: (i, 0)),             # d^-1/2 rows
        ],
        out_specs=pl.BlockSpec((tm_x, fout_pad), lambda i: (i, 0)),
        out_shape=jax.ShapeDtypeStruct((n_pad, fout_pad), compute_dtype),
        compiler_params=pltpu.CompilerParams(
            dimension_semantics=("parallel",),
            vmem_limit_bytes=vmem_limit),
    )(x_pad.astype(compute_dtype), w_pad, d_pad)


def _aggregate(a_pad, xw_pad, d_pad, b, *, apply_relu, tm, tk, out_dtype,
               vmem_limit):
    """out = d^{-1/2} * ((A+I) @ XW_scaled) + b (+ReLU), rows x reduction."""
    n_pad = a_pad.shape[0]
    fout_pad = xw_pad.shape[1]
    b_pad = jnp.pad(b.astype(jnp.float32),
                    (0, fout_pad - b.shape[0])).reshape(1, fout_pad)

    a_bytes = jnp.dtype(a_pad.dtype).itemsize
    xw_bytes = jnp.dtype(xw_pad.dtype).itemsize
    out_bytes = jnp.dtype(out_dtype).itemsize
    # Conservative footprint: resident XW may be double-buffered by the
    # pipeline; A and out tiles are double-buffered; acc is f32.
    resident_footprint = (2 * n_pad * fout_pad * xw_bytes
                          + 2 * tm * tk * a_bytes
                          + tm * fout_pad * 4
                          + 2 * tm * fout_pad * out_bytes)
    xw_resident = resident_footprint <= (vmem_limit * 9) // 10

    if xw_resident:
        # Constant index map -> XW DMA'd into VMEM once, reused by every step.
        xw_spec = pl.BlockSpec((n_pad, fout_pad), lambda i, k: (0, 0))
    else:
        # Fallback: stream (tk, fout_pad) slices along the reduction axis.
        xw_spec = pl.BlockSpec((tk, fout_pad), lambda i, k: (k, 0))

    kernel = functools.partial(_aggregate_kernel, tk=tk,
                               xw_resident=xw_resident, apply_relu=apply_relu)
    return pl.pallas_call(
        kernel,
        grid=(n_pad // tm, n_pad // tk),                   # reduction axis last
        in_specs=[
            pl.BlockSpec((tm, tk), lambda i, k: (i, k)),          # A+I tile
            xw_spec,                                              # scaled XW
            pl.BlockSpec((tm, 1), lambda i, k: (i, 0)),           # d^-1/2 rows
            pl.BlockSpec((1, fout_pad), lambda i, k: (0, 0)),     # bias
        ],
        out_specs=pl.BlockSpec((tm, fout_pad), lambda i, k: (i, 0)),
        out_shape=jax.ShapeDtypeStruct((n_pad, fout_pad), out_dtype),
        scratch_shapes=[pltpu.VMEM((tm, fout_pad), jnp.float32)],
        compiler_params=pltpu.CompilerParams(
            dimension_semantics=("parallel", "arbitrary"),
            vmem_limit_bytes=vmem_limit),
    )(a_pad, xw_pad, d_pad, b_pad)


def gcn_layer(a_pad, x_pad, d_pad, w, b, *, apply_relu, compute_dtype,
              tm, tk, out_dtype, vmem_limit):
    """One GCNConv on padded inputs: d^-1/2 ((A+I) (d^-1/2 X W)) + b (+ReLU)."""
    xw = _feature_transform(x_pad, w, d_pad, compute_dtype=compute_dtype,
                            row_tile_max=max(tm, tk), row_tile_min=tm,
                            vmem_limit=vmem_limit)
    return _aggregate(a_pad, xw, d_pad, b, apply_relu=apply_relu, tm=tm, tk=tk,
                      out_dtype=out_dtype, vmem_limit=vmem_limit)


# -------------------------------- JAX glue ----------------------------------

def adjacency_and_norm(edge_index, num_nodes):
    """Dense A + I (un-normalized) plus d^{-1/2}. The D^-1/2 (.) D^-1/2
    normalization is folded into the Pallas kernels (no extra O(N^2) pass)."""
    src, dst = edge_index[0], edge_index[1]
    adj = jnp.zeros((num_nodes, num_nodes), jnp.float32)
    adj = adj.at[dst, src].add(1.0)            # duplicate edges counted (PyG)
    adj = adj + jnp.eye(num_nodes, dtype=jnp.float32)   # self loops
    deg = adj.sum(axis=1)
    d_inv_sqrt = jnp.where(deg > 0.0, 1.0 / jnp.sqrt(deg), 0.0)
    return adj, d_inv_sqrt


def init_params(key, in_channels, out_channels):
    """Deterministic Glorot init for the three GCNConv layers."""
    hid = 2 * out_channels
    ks = jax.random.split(key, 3)

    def glorot(k, fan_in, fan_out):
        limit = jnp.sqrt(6.0 / (fan_in + fan_out))
        return jax.random.uniform(
            k, (fan_in, fan_out), jnp.float32, -limit, limit)

    return {
        "w1": glorot(ks[0], in_channels, hid),
        "b1": jnp.zeros((hid,), jnp.float32),
        "w_mu": glorot(ks[1], hid, out_channels),
        "b_mu": jnp.zeros((out_channels,), jnp.float32),
        "w_logstd": glorot(ks[2], hid, out_channels),
        "b_logstd": jnp.zeros((out_channels,), jnp.float32),
    }


def gcn_encoder_forward(params, x, edge_index, *,
                        compute_dtype=jnp.bfloat16, tm=None, tk=None):
    """h = relu(conv1(x)); return (conv_mu(h), conv_logstd(h))."""
    n, f_in = x.shape
    out_ch = params["w_mu"].shape[1]

    if jnp.dtype(compute_dtype).itemsize <= 2:   # bf16 operands, f32 accum
        tm = tm or 1024
        tk = tk or 2048
    else:                                        # f32 everywhere
        tm = tm or 512
        tk = tk or 1024
    n_pad, tm, tk = _plan_tiling(n, tm, tk)
    vmem_limit = _vmem_budget_bytes()

    adj, d_inv_sqrt = adjacency_and_norm(edge_index, n)
    # Cast/pad A+I to the compute dtype exactly once, shared by both layers.
    # Entries are small integers -> exact in bf16; d^{-1/2} stays f32.
    a_pad = _pad2d(adj.astype(compute_dtype), n_pad, n_pad)
    d_pad = jnp.pad(d_inv_sqrt, (0, n_pad - n)).reshape(n_pad, 1)
    x_pad = _pad2d(x.astype(jnp.float32), n_pad, _round_up(f_in, LANE))

    # layer 1 (ReLU + left normalization fused into the k==last epilogue)
    h_pad = gcn_layer(a_pad, x_pad, d_pad, params["w1"], params["b1"],
                      apply_relu=True, compute_dtype=compute_dtype,
                      tm=tm, tk=tk, out_dtype=compute_dtype,
                      vmem_limit=vmem_limit)

    # mu & logstd share A+I and h -> one wide lane-dense matmul for both heads
    w_cat = jnp.concatenate([params["w_mu"], params["w_logstd"]], axis=1)
    b_cat = jnp.concatenate([params["b_mu"], params["b_logstd"]], axis=0)
    out_pad = gcn_layer(a_pad, h_pad, d_pad, w_cat, b_cat,
                        apply_relu=False, compute_dtype=compute_dtype,
                        tm=tm, tk=tk, out_dtype=jnp.float32,
                        vmem_limit=vmem_limit)

    mu = out_pad[:n, :out_ch]
    logstd = out_pad[:n, out_ch:2 * out_ch]
    return mu, logstd


def _reference_forward(params, x, edge_index):
    adj, d = adjacency_and_norm(edge_index, x.shape[0])
    a_hat = d[:, None] * adj * d[None, :]
    h = jnp.maximum(a_hat @ (x @ params["w1"]) + params["b1"], 0.0)
    mu = a_hat @ (h @ params["w_mu"]) + params["b_mu"]
    logstd = a_hat @ (h @ params["w_logstd"]) + params["b_logstd"]
    return mu, logstd


# ---------------------------------- main -------------------------------------

if __name__ == "__main__":
    N = 16            # nodes
    IN_CHANNELS = 8
    OUT_CHANNELS = 4  # -> hidden = 8

    key = jax.random.PRNGKey(0)
    k_x, k_p = jax.random.split(key)

    x = jax.random.normal(k_x, (N, IN_CHANNELS), jnp.float32)

    # deterministic bidirectional ring graph: i <-> (i+1) % N
    src = jnp.arange(N, dtype=jnp.int32)
    dst = (src + 1) % N
    edge_index = jnp.stack(
        [jnp.concatenate([src, dst]), jnp.concatenate([dst, src])], axis=0)

    params = init_params(k_p, IN_CHANNELS, OUT_CHANNELS)
    mu_ref, logstd_ref = _reference_forward(params, x, edge_index)

    # f32 path (tight check vs. the plain-JAX reference)
    fwd_f32 = jax.jit(functools.partial(gcn_encoder_forward,
                                        compute_dtype=jnp.float32))
    mu, logstd = fwd_f32(params, x, edge_index)
    jax.block_until_ready((mu, logstd))
    assert mu.shape == (N, OUT_CHANNELS) and logstd.shape == (N, OUT_CHANNELS)
    assert jnp.allclose(mu, mu_ref, atol=1e-4, rtol=1e-4)
    assert jnp.allclose(logstd, logstd_ref, atol=1e-4, rtol=1e-4)

    # default bf16-operand path (f32 accumulation; A+I exact in bf16)
    mu_bf, logstd_bf = jax.jit(gcn_encoder_forward)(params, x, edge_index)
    jax.block_until_ready((mu_bf, logstd_bf))
    assert jnp.allclose(mu_bf, mu_ref, atol=5e-2, rtol=5e-2)
    assert jnp.allclose(logstd_bf, logstd_ref, atol=5e-2, rtol=5e-2)

    print("KERNEL_OK")
</pallas_src>

<mosaic_0001>
module attributes {stable_mosaic.version = 11 : i64} {
  func.func @_xw_kernel(%arg0: i32, %arg1: memref<128x128xf32, #tpu.memory_space<vmem>>, %arg2: memref<128x128xf32, #tpu.memory_space<vmem>>, %arg3: memref<128x1xf32, #tpu.memory_space<vmem>>, %arg4: memref<128x128xf32, #tpu.memory_space<vmem>>) attributes {dimension_semantics = [#tpu.dimension_semantics<parallel>], iteration_bounds = array<i64: 1>, scalar_prefetch = 0 : i64, scratch_operands = 0 : i64, tpu.core_type = #tpu.core_type<tc>, window_params = [{transform_indices = @transform_0, window_bounds = array<i64: 128, 128>}, {pipeline_mode = #tpu.pipeline_mode<synchronous>, transform_indices = @transform_1, window_bounds = array<i64: 128, 128>}, {transform_indices = @transform_2, window_bounds = array<i64: 128, 1>}, {transform_indices = @transform_3, window_bounds = array<i64: 128, 128>}]} {
    %c0 = arith.constant 0 : index
    %c0_0 = arith.constant 0 : index
    %0 = vector.load %arg1[%c0, %c0_0] : memref<128x128xf32, #tpu.memory_space<vmem>>, vector<128x128xf32>
    %c0_1 = arith.constant 0 : index
    %c0_2 = arith.constant 0 : index
    %1 = vector.load %arg2[%c0_1, %c0_2] : memref<128x128xf32, #tpu.memory_space<vmem>>, vector<128x128xf32>
    %cst = arith.constant dense<0.000000e+00> : vector<128x128xf32>
    %2 = tpu.matmul %0, %1, %cst {dimension_numbers = #tpu.dot_dimension_numbers<[1], [0], [0], [1], [0, 0, 1, 1], [], []>} : vector<128x128xf32>, vector<128x128xf32>, vector<128x128xf32> -> vector<128x128xf32>
    %c0_3 = arith.constant 0 : index
    %c0_4 = arith.constant 0 : index
    %3 = vector.load %arg3[%c0_3, %c0_4] : memref<128x1xf32, #tpu.memory_space<vmem>>, vector<128x1xf32>
    %4 = vector.broadcast %3 : vector<128x1xf32> to vector<128x128xf32>
    %5 = arith.mulf %2, %4 : vector<128x128xf32>
    %c0_5 = arith.constant 0 : index
    %c0_6 = arith.constant 0 : index
    %6 = vector.load %arg4[%c0_5, %c0_6] : memref<128x128xf32, #tpu.memory_space<vmem>>, vector<128x128xf32>
    tpu.vector_store %arg4[%c0_5, %c0_6], %5 {strides = array<i32>} : memref<128x128xf32, #tpu.memory_space<vmem>>, vector<128x128xf32>,
    return
  }
  func.func @transform_0(%arg0: i32) -> (i32, i32) {
    %c0_i32 = arith.constant 0 : i32
    %c0_i32_0 = arith.constant 0 : i32
    return %arg0, %c0_i32 : i32, i32
  }
  func.func @transform_1(%arg0: i32) -> (i32, i32) {
    %c0_i32 = arith.constant 0 : i32
    %c0_i32_0 = arith.constant 0 : i32
    %c0_i32_1 = arith.constant 0 : i32
    return %c0_i32, %c0_i32_0 : i32, i32
  }
  func.func @transform_2(%arg0: i32) -> (i32, i32) {
    %c0_i32 = arith.constant 0 : i32
    %c0_i32_0 = arith.constant 0 : i32
    return %arg0, %c0_i32 : i32, i32
  }
  func.func @transform_3(%arg0: i32) -> (i32, i32) {
    %c0_i32 = arith.constant 0 : i32
    %c0_i32_0 = arith.constant 0 : i32
    return %arg0, %c0_i32 : i32, i32
  }
}

module attributes {stable_mosaic.version = 11 : i64} {
  func.func @_aggregate_kernel(%arg0: i32, %arg1: i32, %arg2: memref<128x128xf32, #tpu.memory_space<vmem>>, %arg3: memref<128x128xf32, #tpu.memory_space<vmem>>, %arg4: memref<128x1xf32, #tpu.memory_space<vmem>>, %arg5: memref<1x128xf32, #tpu.memory_space<vmem>>, %arg6: memref<128x128xf32, #tpu.memory_space<vmem>>, %arg7: memref<128x128xf32, #tpu.memory_space<vmem>>) attributes {dimension_semantics = [#tpu.dimension_semantics<parallel>, #tpu.dimension_semantics<arbitrary>], iteration_bounds = array<i64: 1, 1>, scalar_prefetch = 0 : i64, scratch_operands = 1 : i64, tpu.core_type = #tpu.core_type<tc>, window_params = [{transform_indices = @transform_0, window_bounds = array<i64: 128, 128>}, {pipeline_mode = #tpu.pipeline_mode<synchronous>, transform_indices = @transform_1, window_bounds = array<i64: 128, 128>}, {transform_indices = @transform_2, window_bounds = array<i64: 128, 1>}, {pipeline_mode = #tpu.pipeline_mode<synchronous>, transform_indices = @transform_3, window_bounds = array<i64: 1, 128>}, {transform_indices = @transform_4, window_bounds = array<i64: 128, 128>}]} {
    %c0_i32 = arith.constant 0 : i32
    %0 = arith.cmpi eq, %arg1, %c0_i32 : i32
    %1 = arith.extui %0 : i1 to i32
    %c0_i32_0 = arith.constant 0 : i32
    %2 = arith.cmpi ne, %1, %c0_i32_0 : i32
    scf.if %2 {
      %cst_9 = arith.constant 0.000000e+00 : f32
      %15 = vector.broadcast %cst_9 : f32 to vector<128x128xf32>
      %c0_10 = arith.constant 0 : index
      %c0_11 = arith.constant 0 : index
      %16 = vector.load %arg7[%c0_10, %c0_11] : memref<128x128xf32, #tpu.memory_space<vmem>>, vector<128x128xf32>
      tpu.vector_store %arg7[%c0_10, %c0_11], %15 {strides = array<i32>} : memref<128x128xf32, #tpu.memory_space<vmem>>, vector<128x128xf32>,
    } else {
    }
    %c128_i32 = arith.constant 128 : i32
    %3 = arith.muli %arg1, %c128_i32 : i32
    %4 = tpu.assume_multiple %3, 128 : i32
    %5 = arith.index_cast %4 : i32 to index
    %c0 = arith.constant 0 : index
    %6 = vector.load %arg3[%5, %c0] : memref<128x128xf32, #tpu.memory_space<vmem>>, vector<128x128xf32>
    %c0_1 = arith.constant 0 : index
    %c0_2 = arith.constant 0 : index
    %7 = vector.load %arg7[%c0_1, %c0_2] : memref<128x128xf32, #tpu.memory_space<vmem>>, vector<128x128xf32>
    %c0_3 = arith.constant 0 : index
    %c0_4 = arith.constant 0 : index
    %8 = vector.load %arg2[%c0_3, %c0_4] : memref<128x128xf32, #tpu.memory_space<vmem>>, vector<128x128xf32>
    %cst = arith.constant dense<0.000000e+00> : vector<128x128xf32>
    %9 = tpu.matmul %8, %6, %cst {dimension_numbers = #tpu.dot_dimension_numbers<[1], [0], [0], [1], [0, 0, 1, 1], [], []>} : vector<128x128xf32>, vector<128x128xf32>, vector<128x128xf32> -> vector<128x128xf32>
    %10 = arith.addf %7, %9 : vector<128x128xf32>
    %c0_5 = arith.constant 0 : index
    %c0_6 = arith.constant 0 : index
    %11 = vector.load %arg7[%c0_5, %c0_6] : memref<128x128xf32, #tpu.memory_space<vmem>>, vector<128x128xf32>
    tpu.vector_store %arg7[%c0_5, %c0_6], %10 {strides = array<i32>} : memref<128x128xf32, #tpu.memory_space<vmem>>, vector<128x128xf32>,
    %c0_i32_7 = arith.constant 0 : i32
    %12 = arith.cmpi eq, %arg1, %c0_i32_7 : i32
    %13 = arith.extui %12 : i1 to i32
    %c0_i32_8 = arith.constant 0 : i32
    %14 = arith.cmpi ne, %13, %c0_i32_8 : i32
    scf.if %14 {
      %c0_9 = arith.constant 0 : index
      %c0_10 = arith.constant 0 : index
      %15 = vector.load %arg4[%c0_9, %c0_10] : memref<128x1xf32, #tpu.memory_space<vmem>>, vector<128x1xf32>
      %c0_11 = arith.constant 0 : index
      %c0_12 = arith.constant 0 : index
      %16 = vector.load %arg7[%c0_11, %c0_12] : memref<128x128xf32, #tpu.memory_space<vmem>>, vector<128x128xf32>
      %17 = vector.broadcast %15 : vector<128x1xf32> to vector<128x128xf32>
      %18 = arith.mulf %16, %17 : vector<128x128xf32>
      %c0_13 = arith.constant 0 : index
      %c0_14 = arith.constant 0 : index
      %19 = vector.load %arg5[%c0_13, %c0_14] : memref<1x128xf32, #tpu.memory_space<vmem>>, vector<1x128xf32>
      %20 = vector.broadcast %19 : vector<1x128xf32> to vector<128x128xf32>
      %21 = arith.addf %18, %20 : vector<128x128xf32>
      %cst_15 = arith.constant 0.000000e+00 : f32
      %22 = vector.broadcast %cst_15 : f32 to vector<128x128xf32>
      %23 = arith.maximumf %21, %22 : vector<128x128xf32>
      %cst_16 = arith.constant 0.000000e+00 : f32
      %24 = vector.broadcast %cst_16 : f32 to vector<128x1xf32>
      %25 = arith.cmpf ogt, %15, %24 : vector<128x1xf32>
      %cst_17 = arith.constant 0.000000e+00 : f32
      %26 = vector.shape_cast %25 : vector<128x1xi1> to vector<128x1xi1>
      %27 = vector.broadcast %26 : vector<128x1xi1> to vector<128x128xi1>
      %28 = vector.broadcast %cst_17 : f32 to vector<128x128xf32>
      %29 = arith.select %27, %23, %28 : vector<128x128xi1>, vector<128x128xf32>
      %c0_18 = arith.constant 0 : index
      %c0_19 = arith.constant 0 : index
      %30 = vector.load %arg6[%c0_18, %c0_19] : memref<128x128xf32, #tpu.memory_space<vmem>>, vector<128x128xf32>
      tpu.vector_store %arg6[%c0_18, %c0_19], %29 {strides = array<i32>} : memref<128x128xf32, #tpu.memory_space<vmem>>, vector<128x128xf32>,
    } else {
    }
    return
  }
  func.func @transform_0(%arg0: i32, %arg1: i32) -> (i32, i32) {
    %c0_i32 = arith.constant 0 : i32
    return %arg0, %arg1 : i32, i32
  }
  func.func @transform_1(%arg0: i32, %arg1: i32) -> (i32, i32) {
    %c0_i32 = arith.constant 0 : i32
    %c0_i32_0 = arith.constant 0 : i32
    %c0_i32_1 = arith.constant 0 : i32
    return %c0_i32, %c0_i32_0 : i32, i32
  }
  func.func @transform_2(%arg0: i32, %arg1: i32) -> (i32, i32) {
    %c0_i32 = arith.constant 0 : i32
    %c0_i32_0 = arith.constant 0 : i32
    return %arg0, %c0_i32 : i32, i32
  }
  func.func @transform_3(%arg0: i32, %arg1: i32) -> (i32, i32) {
    %c0_i32 = arith.constant 0 : i32
    %c0_i32_0 = arith.constant 0 : i32
    %c0_i32_1 = arith.constant 0 : i32
    return %c0_i32, %c0_i32_0 : i32, i32
  }
  func.func @transform_4(%arg0: i32, %arg1: i32) -> (i32, i32) {
    %c0_i32 = arith.constant 0 : i32
    %c0_i32_0 = arith.constant 0 : i32
    return %arg0, %c0_i32 : i32, i32
  }
}

module attributes {stable_mosaic.version = 11 : i64} {
  func.func @_aggregate_kernel(%arg0: i32, %arg1: i32, %arg2: memref<128x128xf32, #tpu.memory_space<vmem>>, %arg3: memref<128x128xf32, #tpu.memory_space<vmem>>, %arg4: memref<128x1xf32, #tpu.memory_space<vmem>>, %arg5: memref<1x128xf32, #tpu.memory_space<vmem>>, %arg6: memref<128x128xf32, #tpu.memory_space<vmem>>, %arg7: memref<128x128xf32, #tpu.memory_space<vmem>>) attributes {dimension_semantics = [#tpu.dimension_semantics<parallel>, #tpu.dimension_semantics<arbitrary>], iteration_bounds = array<i64: 1, 1>, scalar_prefetch = 0 : i64, scratch_operands = 1 : i64, tpu.core_type = #tpu.core_type<tc>, window_params = [{transform_indices = @transform_0, window_bounds = array<i64: 128, 128>}, {pipeline_mode = #tpu.pipeline_mode<synchronous>, transform_indices = @transform_1, window_bounds = array<i64: 128, 128>}, {transform_indices = @transform_2, window_bounds = array<i64: 128, 1>}, {pipeline_mode = #tpu.pipeline_mode<synchronous>, transform_indices = @transform_3, window_bounds = array<i64: 1, 128>}, {transform_indices = @transform_4, window_bounds = array<i64: 128, 128>}]} {
    %c0_i32 = arith.constant 0 : i32
    %0 = arith.cmpi eq, %arg1, %c0_i32 : i32
    %1 = arith.extui %0 : i1 to i32
    %c0_i32_0 = arith.constant 0 : i32
    %2 = arith.cmpi ne, %1, %c0_i32_0 : i32
    scf.if %2 {
      %cst_9 = arith.constant 0.000000e+00 : f32
      %15 = vector.broadcast %cst_9 : f32 to vector<128x128xf32>
      %c0_10 = arith.constant 0 : index
      %c0_11 = arith.constant 0 : index
      %16 = vector.load %arg7[%c0_10, %c0_11] : memref<128x128xf32, #tpu.memory_space<vmem>>, vector<128x128xf32>
      tpu.vector_store %arg7[%c0_10, %c0_11], %15 {strides = array<i32>} : memref<128x128xf32, #tpu.memory_space<vmem>>, vector<128x128xf32>,
    } else {
    }
    %c128_i32 = arith.constant 128 : i32
    %3 = arith.muli %arg1, %c128_i32 : i32
    %4 = tpu.assume_multiple %3, 128 : i32
    %5 = arith.index_cast %4 : i32 to index
    %c0 = arith.constant 0 : index
    %6 = vector.load %arg3[%5, %c0] : memref<128x128xf32, #tpu.memory_space<vmem>>, vector<128x128xf32>
    %c0_1 = arith.constant 0 : index
    %c0_2 = arith.constant 0 : index
    %7 = vector.load %arg7[%c0_1, %c0_2] : memref<128x128xf32, #tpu.memory_space<vmem>>, vector<128x128xf32>
    %c0_3 = arith.constant 0 : index
    %c0_4 = arith.constant 0 : index
    %8 = vector.load %arg2[%c0_3, %c0_4] : memref<128x128xf32, #tpu.memory_space<vmem>>, vector<128x128xf32>
    %cst = arith.constant dense<0.000000e+00> : vector<128x128xf32>
    %9 = tpu.matmul %8, %6, %cst {dimension_numbers = #tpu.dot_dimension_numbers<[1], [0], [0], [1], [0, 0, 1, 1], [], []>} : vector<128x128xf32>, vector<128x128xf32>, vector<128x128xf32> -> vector<128x128xf32>
    %10 = arith.addf %7, %9 : vector<128x128xf32>
    %c0_5 = arith.constant 0 : index
    %c0_6 = arith.constant 0 : index
    %11 = vector.load %arg7[%c0_5, %c0_6] : memref<128x128xf32, #tpu.memory_space<vmem>>, vector<128x128xf32>
    tpu.vector_store %arg7[%c0_5, %c0_6], %10 {strides = array<i32>} : memref<128x128xf32, #tpu.memory_space<vmem>>, vector<128x128xf32>,
    %c0_i32_7 = arith.constant 0 : i32
    %12 = arith.cmpi eq, %arg1, %c0_i32_7 : i32
    %13 = arith.extui %12 : i1 to i32
    %c0_i32_8 = arith.constant 0 : i32
    %14 = arith.cmpi ne, %13, %c0_i32_8 : i32
    scf.if %14 {
      %c0_9 = arith.constant 0 : index
      %c0_10 = arith.constant 0 : index
      %15 = vector.load %arg4[%c0_9, %c0_10] : memref<128x1xf32, #tpu.memory_space<vmem>>, vector<128x1xf32>
      %c0_11 = arith.constant 0 : index
      %c0_12 = arith.constant 0 : index
      %16 = vector.load %arg7[%c0_11, %c0_12] : memref<128x128xf32, #tpu.memory_space<vmem>>, vector<128x128xf32>
      %17 = vector.broadcast %15 : vector<128x1xf32> to vector<128x128xf32>
      %18 = arith.mulf %16, %17 : vector<128x128xf32>
      %c0_13 = arith.constant 0 : index
      %c0_14 = arith.constant 0 : index
      %19 = vector.load %arg5[%c0_13, %c0_14] : memref<1x128xf32, #tpu.memory_space<vmem>>, vector<1x128xf32>
      %20 = vector.broadcast %19 : vector<1x128xf32> to vector<128x128xf32>
      %21 = arith.addf %18, %20 : vector<128x128xf32>
      %cst_15 = arith.constant 0.000000e+00 : f32
      %22 = vector.broadcast %cst_15 : f32 to vector<128x1xf32>
      %23 = arith.cmpf ogt, %15, %22 : vector<128x1xf32>
      %cst_16 = arith.constant 0.000000e+00 : f32
      %24 = vector.shape_cast %23 : vector<128x1xi1> to vector<128x1xi1>
      %25 = vector.broadcast %24 : vector<128x1xi1> to vector<128x128xi1>
      %26 = vector.broadcast %cst_16 : f32 to vector<128x128xf32>
      %27 = arith.select %25, %21, %26 : vector<128x128xi1>, vector<128x128xf32>
      %c0_17 = arith.constant 0 : index
      %c0_18 = arith.constant 0 : index
      %28 = vector.load %arg6[%c0_17, %c0_18] : memref<128x128xf32, #tpu.memory_space<vmem>>, vector<128x128xf32>
      tpu.vector_store %arg6[%c0_17, %c0_18], %27 {strides = array<i32>} : memref<128x128xf32, #tpu.memory_space<vmem>>, vector<128x128xf32>,
    } else {
    }
    return
  }
  func.func @transform_0(%arg0: i32, %arg1: i32) -> (i32, i32) {
    %c0_i32 = arith.constant 0 : i32
    return %arg0, %arg1 : i32, i32
  }
  func.func @transform_1(%arg0: i32, %arg1: i32) -> (i32, i32) {
    %c0_i32 = arith.constant 0 : i32
    %c0_i32_0 = arith.constant 0 : i32
    %c0_i32_1 = arith.constant 0 : i32
    return %c0_i32, %c0_i32_0 : i32, i32
  }
  func.func @transform_2(%arg0: i32, %arg1: i32) -> (i32, i32) {
    %c0_i32 = arith.constant 0 : i32
    %c0_i32_0 = arith.constant 0 : i32
    return %arg0, %c0_i32 : i32, i32
  }
  func.func @transform_3(%arg0: i32, %arg1: i32) -> (i32, i32) {
    %c0_i32 = arith.constant 0 : i32
    %c0_i32_0 = arith.constant 0 : i32
    %c0_i32_1 = arith.constant 0 : i32
    return %c0_i32, %c0_i32_0 : i32, i32
  }
  func.func @transform_4(%arg0: i32, %arg1: i32) -> (i32, i32) {
    %c0_i32 = arith.constant 0 : i32
    %c0_i32_0 = arith.constant 0 : i32
    return %arg0, %c0_i32 : i32, i32
  }
}

</mosaic_0001>

<bundles_post_ra>
// kernel: gcn_encoder_forward.4
= control target key start
LH: loop header
LB: loop body
LE: loop exit
PB: predicated region body
PF: predicated region fallthrough
CT: control target
= control target key end

     0   :  { %v295_v0 = vmov 0   ;;  %s511_s2 = inlined_call_operand.vmem [shape: f32[128,1], index: 2, kind: input, shape index: {}]   ;;  %s512_s1 = inlined_call_operand.vmem [shape: f32[128,128], index: 1, kind: input, shape index: {}]   ;;  %s513_s0 = inlined_call_operand.vmem [shape: f32[128,128], index: 0, kind: input, shape index: {}]   ;;  %s514_s3 = inlined_call_operand.vmem [shape: f32[128,128], index: 3, kind: output, shape index: {}]  }
   0x1   :  { %292 = vset.pattern.permute.xlu0 %v295_v0  ;;  %v111_v1 = vld [vmem:[%s511_s2] sm:$0xff]  ;;  %v45_v2 = vld [vmem:[%s512_s1 + $0x78] sm:$0xff]  ;;  %v44_v3 = vld [vmem:[%s512_s1 + $0x70] sm:$0xff]  ;;  %293 = vset.pattern.permute.xlu1 %v295_v0 }
   0x2   :  { %129 = vperm.xlu0 %292, %v111_v1   ;;  %46 = vmatpush.msra.mxu0 %v45_v2  ;;  %v43_v4 = vld [vmem:[%s512_s1 + $0x68] sm:$0xff]  ;;  %v42_v5 = vld [vmem:[%s512_s1 + $0x60] sm:$0xff]  ;;  %v113_v6 = vld [vmem:[%s511_s2 + $0x10] sm:$0xff] }
   0x3   :  { %243 = vmatpush.msra.mxu1 %v45_v2  ;;  %244 = vmatpush.msra.mxu2 %v45_v2  ;;  %v112_v7 = vld [vmem:[%s511_s2 + $0x8] sm:$0xff]  ;;  %v41_v8 = vld [vmem:[%s512_s1 + $0x58] sm:$0xff]  ;;  %v40_v9 = vld [vmem:[%s512_s1 + $0x50] sm:$0xff] }
   0x4   :  { %245 = vmatpush.msra.mxu3 %v45_v2  ;;  %47 = vmatpush.msra.mxu0 %v44_v3  ;;  %v39_v10 = vld [vmem:[%s512_s1 + $0x48] sm:$0xff]  ;;  %v38_v11 = vld [vmem:[%s512_s1 + $0x40] sm:$0xff]  ;;  %v114_v12 = vld [vmem:[%s511_s2 + $0x18] sm:$0xff] }
   0x5   :  { %246 = vmatpush.msra.mxu1 %v44_v3  ;;  %247 = vmatpush.msra.mxu2 %v44_v3  ;;  %v117_v13 = vld [vmem:[%s511_s2 + $0x30] sm:$0xff]  ;;  %v37_v14 = vld [vmem:[%s512_s1 + $0x38] sm:$0xff]  ;;  %v35_v16 = vld [vmem:[%s512_s1 + $0x28] sm:$0xff] }
   0x6   :  { %248 = vmatpush.msra.mxu3 %v44_v3  ;;  %48 = vmatpush.msra.mxu0 %v43_v4  ;;  %v36_v15 = vld [vmem:[%s512_s1 + $0x30] sm:$0xff]  ;;  %v34_v17 = vld [vmem:[%s512_s1 + $0x20] sm:$0xff]  ;;  %v118_v18 = vld [vmem:[%s511_s2 + $0x38] sm:$0xff] }
   0x7   :  { %249 = vmatpush.msra.mxu1 %v43_v4  ;;  %250 = vmatpush.msra.mxu2 %v43_v4  ;;  %v120_v19 = vld [vmem:[%s511_s2 + $0x48] sm:$0xff]  ;;  %v33_v20 = vld [vmem:[%s512_s1 + $0x18] sm:$0xff]  ;;  %v32_v21 = vld [vmem:[%s512_s1 + $0x10] sm:$0xff] }
   0x8   :  { %251 = vmatpush.msra.mxu3 %v43_v4  ;;  %49 = vmatpush.msra.mxu0 %v42_v5  ;;  %v31_v22 = vld [vmem:[%s512_s1 + $0x8] sm:$0xff]  ;;  %v30_v23 = vld [vmem:[%s512_s1] sm:$0xff]  ;;  %v121_v29 = vld [vmem:[%s511_s2 + $0x50] sm:$0xff] }
   0x9   :  { %252 = vmatpush.msra.mxu1 %v42_v5  ;;  %253 = vmatpush.msra.mxu2 %v42_v5  ;;  %v14_v24 = vld [vmem:[%s513_s0] sm:$0xff]  ;;  %v15_v31 = vld [vmem:[%s513_s0 + $0x8] sm:$0xff]  ;;  %v126_v37 = vld [vmem:[%s511_s2 + $0x78] sm:$0xff] }
   0xa   :  { %254 = vmatpush.msra.mxu3 %v42_v5  ;;  %139 = vperm.xlu1 %293, %v113_v6   ;;  %v18_v25 = vld [vmem:[%s513_s0 + $0x20] sm:$0xff]  ;;  %v19_v32 = vld [vmem:[%s513_s0 + $0x28] sm:$0xff]  ;;  %v16_v38 = vld [vmem:[%s513_s0 + $0x10] sm:$0xff] }
   0xb   :  { %134 = vperm.xlu0 %292, %v112_v7   ;;  %50 = vmatpush.msra.mxu0 %v41_v8  ;;  %v22_v26 = vld [vmem:[%s513_s0 + $0x40] sm:$0xff]  ;;  %v23_v33 = vld [vmem:[%s513_s0 + $0x48] sm:$0xff]  ;;  %v20_v39 = vld [vmem:[%s513_s0 + $0x30] sm:$0xff] }
   0xc   :  { %255 = vmatpush.msra.mxu1 %v41_v8  ;;  %256 = vmatpush.msra.mxu2 %v41_v8  ;;  %v26_v27 = vld [vmem:[%s513_s0 + $0x60] sm:$0xff]  ;;  %v27_v34 = vld [vmem:[%s513_s0 + $0x68] sm:$0xff]  ;;  %v24_v40 = vld [vmem:[%s513_s0 + $0x50] sm:$0xff] }
   0xd   :  { %257 = vmatpush.msra.mxu3 %v41_v8  ;;  %51 = vmatpush.msra.mxu0 %v40_v9  ;;  %v115_v28 = vld [vmem:[%s511_s2 + $0x20] sm:$0xff]  ;;  %v116_v35 = vld [vmem:[%s511_s2 + $0x28] sm:$0xff]  ;;  %v28_v41 = vld [vmem:[%s513_s0 + $0x70] sm:$0xff] }
   0xe   :  { %258 = vmatpush.msra.mxu1 %v40_v9  ;;  %259 = vmatpush.msra.mxu2 %v40_v9  ;;  %v123_v30 = vld [vmem:[%s511_s2 + $0x60] sm:$0xff]  ;;  %v124_v36 = vld [vmem:[%s511_s2 + $0x68] sm:$0xff]  ;;  %v17_v43 = vld [vmem:[%s513_s0 + $0x18] sm:$0xff] }
   0xf   :  { %260 = vmatpush.msra.mxu3 %v40_v9  ;;  %52 = vmatpush.msra.mxu0 %v39_v10  ;;  %v119_v42 = vld [vmem:[%s511_s2 + $0x40] sm:$0xff]  ;;  %v21_v44 = vld [vmem:[%s513_s0 + $0x38] sm:$0xff]  ;;  %v125_v48 = vld [vmem:[%s511_s2 + $0x70] sm:$0xff] }
  0x10   :  { %261 = vmatpush.msra.mxu1 %v39_v10  ;;  %262 = vmatpush.msra.mxu2 %v39_v10  ;;  %v25_v45 = vld [vmem:[%s513_s0 + $0x58] sm:$0xff] }
  0x11   :  { %263 = vmatpush.msra.mxu3 %v39_v10  ;;  %53 = vmatpush.msra.mxu0 %v38_v11  ;;  %v29_v46 = vld [vmem:[%s513_s0 + $0x78] sm:$0xff] }
  0x12   :  { %264 = vmatpush.msra.mxu1 %v38_v11  ;;  %265 = vmatpush.msra.mxu2 %v38_v11  ;;  %v122_v47 = vld [vmem:[%s511_s2 + $0x58] sm:$0xff] }
  0x13   :  { %266 = vmatpush.msra.mxu3 %v38_v11  ;;  %144 = vperm.xlu1 %293, %v114_v12  }
  0x14   :  { %159 = vperm.xlu0 %292, %v117_v13   ;;  %54 = vmatpush.msra.mxu0 %v37_v14 }
  0x15   :  { %267 = vmatpush.msra.mxu1 %v37_v14  ;;  %268 = vmatpush.msra.mxu2 %v37_v14 }
  0x16   :  { %269 = vmatpush.msra.mxu3 %v37_v14  ;;  %55 = vmatpush.msra.mxu0 %v36_v15 }
  0x17   :  { %270 = vmatpush.msra.mxu1 %v36_v15  ;;  %271 = vmatpush.msra.mxu2 %v36_v15 }
  0x18   :  { %272 = vmatpush.msra.mxu3 %v36_v15  ;;  %56 = vmatpush.msra.mxu0 %v35_v16 }
  0x19   :  { %273 = vmatpush.msra.mxu1 %v35_v16  ;;  %274 = vmatpush.msra.mxu2 %v35_v16 }
  0x1a   :  { %275 = vmatpush.msra.mxu3 %v35_v16  ;;  %57 = vmatpush.msra.mxu0 %v34_v17 }
  0x1b   :  { %276 = vmatpush.msra.mxu1 %v34_v17  ;;  %277 = vmatpush.msra.mxu2 %v34_v17 }
  0x1c   :  { %278 = vmatpush.msra.mxu3 %v34_v17  ;;  %164 = vperm.xlu1 %293, %v118_v18  }
  0x1d   :  { %174 = vperm.xlu0 %292, %v120_v19   ;;  %58 = vmatpush.msra.mxu0 %v33_v20 }
  0x1e   :  { %279 = vmatpush.msra.mxu1 %v33_v20  ;;  %280 = vmatpush.msra.mxu2 %v33_v20 }
  0x1f   :  { %281 = vmatpush.msra.mxu3 %v33_v20  ;;  %59 = vmatpush.msra.mxu0 %v32_v21 }
  0x20   :  { %282 = vmatpush.msra.mxu1 %v32_v21  ;;  %283 = vmatpush.msra.mxu2 %v32_v21 }
  0x21   :  { %284 = vmatpush.msra.mxu3 %v32_v21  ;;  %60 = vmatpush.msra.mxu0 %v31_v22 }
  0x22   :  { %285 = vmatpush.msra.mxu1 %v31_v22  ;;  %286 = vmatpush.msra.mxu2 %v31_v22 }
  0x23   :  { %287 = vmatpush.msra.mxu3 %v31_v22  ;;  %61 = vmatpush.msra.mxu0 %v30_v23 }
  0x24   :  { %288 = vmatpush.msra.mxu1 %v30_v23  ;;  %289 = vmatpush.msra.mxu2 %v30_v23 }
  0x25   :  { %290 = vmatpush.msra.mxu3 %v30_v23  ;;  %294 = vset.pattern.permute.xlu2 %v295_v0 }
  0x26   :  { %62 = vmatmul.f32.vlgmr.msra.gmra.mxu0 %v14_v24  ;;  %74 = vmatmul.f32.vlgmr.msra.gmra.mxu1 %v18_v25 }
  0x27   :  { %86 = vmatmul.f32.vlgmr.msra.gmra.mxu2 %v22_v26  ;;  %98 = vmatmul.f32.vlgmr.msra.gmra.mxu3 %v26_v27 }
  0x28   :  { %149 = vperm.xlu2 %294, %v115_v28   ;;  %179 = vperm.xlu1 %293, %v121_v29  }
  0x29   :  { %189 = vperm.xlu0 %292, %v123_v30  }
  0x2e   :  { %65 = vmatmul.f32.gmra.mxu0 %v15_v31  ;;  %77 = vmatmul.f32.gmra.mxu1 %v19_v32 }
  0x2f   :  { %89 = vmatmul.f32.gmra.mxu2 %v23_v33  ;;  %101 = vmatmul.f32.gmra.mxu3 %v27_v34 }
  0x30   :  { %154 = vperm.xlu2 %294, %v116_v35   ;;  %194 = vperm.xlu1 %293, %v124_v36  }
  0x31   :  { %204 = vperm.xlu0 %292, %v126_v37  }
  0x36   :  { %68 = vmatmul.f32.gmra.mxu0 %v16_v38  ;;  %80 = vmatmul.f32.gmra.mxu1 %v20_v39 }
  0x37   :  { %92 = vmatmul.f32.gmra.mxu2 %v24_v40  ;;  %104 = vmatmul.f32.gmra.mxu3 %v28_v41 }
  0x38   :  { %169 = vperm.xlu2 %294, %v119_v42  }
  0x3e   :  { %71 = vmatmul.f32.gmra.mxu0 %v17_v43  ;;  %83 = vmatmul.f32.gmra.mxu1 %v21_v44 }
  0x3f   :  { %95 = vmatmul.f32.gmra.mxu2 %v25_v45  ;;  %107 = vmatmul.f32.gmra.mxu3 %v29_v46 }
  0x40   :  { %184 = vperm.xlu2 %294, %v122_v47  }
  0x48   :  { %199 = vperm.xlu2 %294, %v125_v48  }
  0x74   :  { %v130_v49 = vpop.permute.xlu0 %129 }
  0x7c   :  { %v140_v50 = vpop.permute.xlu1 %139 }
  0x7d   :  { %v135_v51 = vpop.permute.xlu0 %134 }
  0x82   :  { %v150_v52 = vpop.permute.xlu2 %149 }
  0x85   :  { %v145_v53 = vpop.permute.xlu1 %144 }
  0x86   :  { %v160_v54 = vpop.permute.xlu0 %159 }
  0x8a   :  { %v155_v55 = vpop.permute.xlu2 %154 }
  0x8e   :  { %v165_v56 = vpop.permute.xlu1 %164 }
  0x8f   :  { %v175_v57 = vpop.permute.xlu0 %174 }
  0x92   :  { %v170_v61 = vpop.permute.xlu2 %169 }
  0x9a   :  { %v180_v63 = vpop.permute.xlu1 %179  ;;  %v185_v9 = vpop.permute.xlu2 %184 }
  0x9b   :  { %v190_v0 = vpop.permute.xlu0 %189 }
  0xa2   :  { %v195_v10 = vpop.permute.xlu1 %194  ;;  %v200_v19 = vpop.permute.xlu2 %199 }
  0xa3   :  { %v63_v58 = vpop.f32.mrf.mxu0  ;;  %v75_v60 = vpop.f32.mrf.mxu1 }
  0xa4   :  { %v207_v59 = vmul.f32 %v130_v49, %v63_v58  ;;  %v211_v62 = vmul.f32 %v150_v52, %v75_v60  ;;  %v205_v28 = vpop.permute.xlu0 %204 }
  0xa6   :  { %223 = vst [vmem:[%s514_s3] sm:$0xff] %v207_v59 }
  0xa7   :  { %227 = vst [vmem:[%s514_s3 + $0x20] sm:$0xff] %v211_v62 }
  0xaa   :  { %v87_v1 = vpop.f32.mrf.mxu2  ;;  %v99_v2 = vpop.f32.mrf.mxu3 }
  0xab   :  { %v215_v3 = vmul.f32 %v170_v61, %v87_v1  ;;  %v219_v4 = vmul.f32 %v190_v0, %v99_v2  ;;  %v66_v5 = vpop.f32.mrf.mxu0  ;;  %v78_v7 = vpop.f32.mrf.mxu1 }
  0xac   :  { %v208_v6 = vmul.f32 %v135_v51, %v66_v5  ;;  %v212_v8 = vmul.f32 %v155_v55, %v78_v7 }
  0xad   :  { %231 = vst [vmem:[%s514_s3 + $0x40] sm:$0xff] %v215_v3 }
  0xae   :  { %235 = vst [vmem:[%s514_s3 + $0x60] sm:$0xff] %v219_v4 }
  0xaf   :  { %224 = vst [vmem:[%s514_s3 + $0x8] sm:$0xff] %v208_v6 }
  0xb0   :  { %228 = vst [vmem:[%s514_s3 + $0x28] sm:$0xff] %v212_v8 }
  0xb2   :  { %v90_v11 = vpop.f32.mrf.mxu2  ;;  %v102_v12 = vpop.f32.mrf.mxu3 }
  0xb3   :  { %v216_v13 = vmul.f32 %v175_v57, %v90_v11  ;;  %v220_v14 = vmul.f32 %v195_v10, %v102_v12  ;;  %v69_v15 = vpop.f32.mrf.mxu0  ;;  %v81_v17 = vpop.f32.mrf.mxu1 }
  0xb4   :  { %v209_v16 = vmul.f32 %v140_v50, %v69_v15  ;;  %v213_v18 = vmul.f32 %v160_v54, %v81_v17 }
  0xb5   :  { %232 = vst [vmem:[%s514_s3 + $0x48] sm:$0xff] %v216_v13 }
  0xb6   :  { %236 = vst [vmem:[%s514_s3 + $0x68] sm:$0xff] %v220_v14 }
  0xb7   :  { %225 = vst [vmem:[%s514_s3 + $0x10] sm:$0xff] %v209_v16 }
  0xb8   :  { %229 = vst [vmem:[%s514_s3 + $0x30] sm:$0xff] %v213_v18 }
  0xba   :  { %v93_v20 = vpop.f32.mrf.mxu2  ;;  %v105_v21 = vpop.f32.mrf.mxu3 }
  0xbb   :  { %v217_v22 = vmul.f32 %v180_v63, %v93_v20  ;;  %v221_v23 = vmul.f32 %v200_v19, %v105_v21  ;;  %v72_v24 = vpop.f32.mrf.mxu0  ;;  %v84_v26 = vpop.f32.mrf.mxu1 }
  0xbc   :  { %v210_v25 = vmul.f32 %v145_v53, %v72_v24  ;;  %v214_v27 = vmul.f32 %v165_v56, %v84_v26 }
  0xbd   :  { %233 = vst [vmem:[%s514_s3 + $0x50] sm:$0xff] %v217_v22 }
  0xbe   :  { %237 = vst [vmem:[%s514_s3 + $0x70] sm:$0xff] %v221_v23 }
  0xbf   :  { %226 = vst [vmem:[%s514_s3 + $0x18] sm:$0xff] %v210_v25 }
  0xc0   :  { %230 = vst [vmem:[%s514_s3 + $0x38] sm:$0xff] %v214_v27 }
  0xc2   :  { %v96_v29 = vpop.f32.mrf.mxu2  ;;  %v108_v30 = vpop.f32.mrf.mxu3 }
  0xc3   :  { %v218_v31 = vmul.f32 %v185_v9, %v96_v29  ;;  %v222_v32 = vmul.f32 %v205_v28, %v108_v30 }
  0xc5   :  { %234 = vst [vmem:[%s514_s3 + $0x58] sm:$0xff] %v218_v31 }
  0xc6   :  { %238 = vst [vmem:[%s514_s3 + $0x78] sm:$0xff] %v222_v32 }

// kernel: gcn_encoder_forward.5
= control target key start
LH: loop header
LB: loop body
LE: loop exit
PB: predicated region body
PF: predicated region fallthrough
CT: control target
= control target key end

     0   :  { %v536_v0 = vmov 0   ;;  %s885_s2 = inlined_call_operand.vmem [shape: f32[128,1], index: 2, kind: input, shape index: {}]   ;;  %s886_s1 = inlined_call_operand.vmem [shape: f32[128,128], index: 1, kind: input, shape index: {}]   ;;  %s887_s0 = inlined_call_operand.vmem [shape: f32[128,128], index: 0, kind: input, shape index: {}]   ;;  %s888_s3 = inlined_call_operand.vmem [shape: f32[1,128], index: 3, kind: input, shape index: {}]   ;;  %s889_s4 = inlined_call_operand.vmem [shape: f32[128,128], index: 4, kind: output, shape index: {}]  }
   0x1   :  { %534 = vset.pattern.permute.xlu2 %v536_v0  ;;  %533 = vset.pattern.permute.xlu1 %v536_v0  ;;  %v567_v1 = vld [vmem:[%s885_s2 + $0x20] sm:$0xff]  ;;  %v572_v2 = vld [vmem:[%s885_s2 + $0x10] sm:$0xff]  ;;  %v54_v4 = vld [vmem:[%s886_s1 + $0x78] sm:$0xff] }
   0x2   :  { %v577_v3 = vld [vmem:[%s885_s2] sm:$0xff]  ;;  %532 = vset.pattern.permute.xlu0 %v536_v0  ;;  %241 = vperm.xlu2 %534, %v567_v1   ;;  %v53_v5 = vld [vmem:[%s886_s1 + $0x70] sm:$0xff]  ;;  %v52_v6 = vld [vmem:[%s886_s1 + $0x68] sm:$0xff]  ;;  %vm355_vm2 = vcmp.gt.f32.partialorder %v567_v1, 0.0  ;;  %vm353_vm3 = vcmp.gt.f32.partialorder %v572_v2, 0.0 }
   0x3   :  { %231 = vperm.xlu1 %533, %v572_v2   ;;  %221 = vperm.xlu0 %532, %v577_v3   ;;  %v51_v7 = vld [vmem:[%s886_s1 + $0x60] sm:$0xff]  ;;  %v598_v8 = vld [vmem:[%s885_s2 + $0x28] sm:$0xff]  ;;  %v603_v9 = vld [vmem:[%s885_s2 + $0x18] sm:$0xff]  ;;  %vm351_vm1 = vcmp.gt.f32.partialorder %v577_v3, 0.0  ;;  %v371_v47 = vsel %vm355_vm2, 1, %v536_v0  ;;  %v369_v48 = vsel %vm353_vm3, 1, %v536_v0 }
   0x4   :  { %87 = vmatpush.msra.mxu0 %v54_v4  ;;  %483 = vmatpush.msra.mxu1 %v54_v4  ;;  %v608_v10 = vld [vmem:[%s885_s2 + $0x8] sm:$0xff]  ;;  %v50_v11 = vld [vmem:[%s886_s1 + $0x58] sm:$0xff]  ;;  %v49_v12 = vld [vmem:[%s886_s1 + $0x50] sm:$0xff]  ;;  %v367_v42 = vsel %vm351_vm1, 1, %v536_v0  ;;  %vm354_vm4 = vcmp.gt.f32.partialorder %v603_v9, 0.0  ;;  %vm356_vm6 = vcmp.gt.f32.partialorder %v598_v8, 0.0 }
   0x5   :  { %484 = vmatpush.msra.mxu2 %v54_v4  ;;  %485 = vmatpush.msra.mxu3 %v54_v4  ;;  %v48_v13 = vld [vmem:[%s886_s1 + $0x48] sm:$0xff]  ;;  %v47_v14 = vld [vmem:[%s886_s1 + $0x40] sm:$0xff]  ;;  %v633_v16 = vld [vmem:[%s885_s2 + $0x38] sm:$0xff]  ;;  %vm352_vm0 = vcmp.gt.f32.partialorder %v608_v10, 0.0  ;;  %v370_v49 = vsel %vm354_vm4, 1, %v536_v0  ;;  %v372_v55 = vsel %vm356_vm6, 1, %v536_v0 }
   0x6   :  { %88 = vmatpush.msra.mxu0 %v53_v5  ;;  %486 = vmatpush.msra.mxu1 %v53_v5  ;;  %v628_v15 = vld [vmem:[%s885_s2 + $0x40] sm:$0xff]  ;;  %v638_v17 = vld [vmem:[%s885_s2 + $0x30] sm:$0xff]  ;;  %v46_v18 = vld [vmem:[%s886_s1 + $0x38] sm:$0xff]  ;;  %v368_v40 = vsel %vm352_vm0, 1, %v536_v0  ;;  %vm358_vm5 = vcmp.gt.f32.partialorder %v633_v16, 0.0 }
   0x7   :  { %487 = vmatpush.msra.mxu2 %v53_v5  ;;  %488 = vmatpush.msra.mxu3 %v53_v5  ;;  %v45_v19 = vld [vmem:[%s886_s1 + $0x30] sm:$0xff]  ;;  %v44_v20 = vld [vmem:[%s886_s1 + $0x28] sm:$0xff]  ;;  %v43_v21 = vld [vmem:[%s886_s1 + $0x20] sm:$0xff]  ;;  %vm357_vm7 = vcmp.gt.f32.partialorder %v638_v17, 0.0  ;;  %v374_v54 = vsel %vm358_vm5, 1, %v536_v0  ;;  %vm359_vm9 = vcmp.gt.f32.partialorder %v628_v15, 0.0 }
   0x8   :  { %89 = vmatpush.msra.mxu0 %v52_v6  ;;  %489 = vmatpush.msra.mxu1 %v52_v6  ;;  %v658_v22 = vld [vmem:[%s885_s2 + $0x58] sm:$0xff]  ;;  %v663_v23 = vld [vmem:[%s885_s2 + $0x50] sm:$0xff]  ;;  %v668_v24 = vld [vmem:[%s885_s2 + $0x48] sm:$0xff]  ;;  %v373_v56 = vsel %vm357_vm7, 1, %v536_v0  ;;  %v375_v58 = vsel %vm359_vm9, 1, %v536_v0 }
   0x9   :  { %490 = vmatpush.msra.mxu2 %v52_v6  ;;  %491 = vmatpush.msra.mxu3 %v52_v6  ;;  %v42_v25 = vld [vmem:[%s886_s1 + $0x18] sm:$0xff]  ;;  %v41_v26 = vld [vmem:[%s886_s1 + $0x10] sm:$0xff]  ;;  %v40_v27 = vld [vmem:[%s886_s1 + $0x8] sm:$0xff]  ;;  %vm361_vm8 = vcmp.gt.f32.partialorder %v663_v23, 0.0  ;;  %vm360_vm10 = vcmp.gt.f32.partialorder %v668_v24, 0.0  ;;  %vm362_vm12 = vcmp.gt.f32.partialorder %v658_v22, 0.0 }
   0xa   :  { %90 = vmatpush.msra.mxu0 %v51_v7  ;;  %492 = vmatpush.msra.mxu1 %v51_v7  ;;  %v39_v28 = vld [vmem:[%s886_s1] sm:$0xff]  ;;  %v700_v33 = vld [vmem:[%s885_s2 + $0x70] sm:$0xff]  ;;  %v705_v34 = vld [vmem:[%s885_s2 + $0x68] sm:$0xff]  ;;  %v377_v57 = vsel %vm361_vm8, 1, %v536_v0  ;;  %v376_v59 = vsel %vm360_vm10, 1, %v536_v0  ;;  %v378_v61 = vsel %vm362_vm12, 1, %v536_v0 }
   0xb   :  { %493 = vmatpush.msra.mxu2 %v51_v7  ;;  %494 = vmatpush.msra.mxu3 %v51_v7  ;;  %v71_v29 = vld [vmem:[%s887_s0] sm:$0xff]  ;;  %v72_v36 = vld [vmem:[%s887_s0 + $0x8] sm:$0xff]  ;;  %v733_v41 = vld [vmem:[%s885_s2 + $0x78] sm:$0xff]  ;;  %vm364_vm11 = vcmp.gt.f32.partialorder %v705_v34, 0.0  ;;  %vm365_vm14 = vcmp.gt.f32.partialorder %v700_v33, 0.0 }
   0xc   :  { %246 = vperm.xlu2 %534, %v598_v8   ;;  %236 = vperm.xlu1 %533, %v603_v9   ;;  %v75_v30 = vld [vmem:[%s887_s0 + $0x20] sm:$0xff]  ;;  %v76_v37 = vld [vmem:[%s887_s0 + $0x28] sm:$0xff]  ;;  %v73_v43 = vld [vmem:[%s887_s0 + $0x10] sm:$0xff]  ;;  %v380_v60 = vsel %vm364_vm11, 1, %v536_v0  ;;  %vm366_vm15 = vcmp.gt.f32.partialorder %v733_v41, 0.0  ;;  %v381_v63 = vsel %vm365_vm14, 1, %v536_v0 }
   0xd   :  { %226 = vperm.xlu0 %532, %v608_v10   ;;  %91 = vmatpush.msra.mxu0 %v50_v11  ;;  %v79_v31 = vld [vmem:[%s887_s0 + $0x40] sm:$0xff]  ;;  %v80_v38 = vld [vmem:[%s887_s0 + $0x48] sm:$0xff]  ;;  %v77_v44 = vld [vmem:[%s887_s0 + $0x30] sm:$0xff]  ;;  %v382_v1 = vsel %vm366_vm15, 1, %v536_v0 }
   0xe   :  { %495 = vmatpush.msra.mxu1 %v50_v11  ;;  %496 = vmatpush.msra.mxu2 %v50_v11  ;;  %v83_v32 = vld [vmem:[%s887_s0 + $0x60] sm:$0xff]  ;;  %v84_v39 = vld [vmem:[%s887_s0 + $0x68] sm:$0xff]  ;;  %v81_v45 = vld [vmem:[%s887_s0 + $0x50] sm:$0xff] }
   0xf   :  { %497 = vmatpush.msra.mxu3 %v50_v11  ;;  %92 = vmatpush.msra.mxu0 %v49_v12  ;;  %v710_v35 = vld [vmem:[%s885_s2 + $0x60] sm:$0xff]  ;;  %v85_v46 = vld [vmem:[%s887_s0 + $0x70] sm:$0xff]  ;;  %v74_v50 = vld [vmem:[%s887_s0 + $0x18] sm:$0xff] }
  0x10   :  { %498 = vmatpush.msra.mxu1 %v49_v12  ;;  %499 = vmatpush.msra.mxu2 %v49_v12  ;;  %v78_v51 = vld [vmem:[%s887_s0 + $0x38] sm:$0xff]  ;;  %vm363_vm13 = vcmp.gt.f32.partialorder %v710_v35, 0.0 }
  0x11   :  { %500 = vmatpush.msra.mxu3 %v49_v12  ;;  %93 = vmatpush.msra.mxu0 %v48_v13  ;;  %v82_v52 = vld [vmem:[%s887_s0 + $0x58] sm:$0xff]  ;;  %v379_v62 = vsel %vm363_vm13, 1, %v536_v0 }
  0x12   :  { %501 = vmatpush.msra.mxu1 %v48_v13  ;;  %502 = vmatpush.msra.mxu2 %v48_v13  ;;  %v86_v53 = vld [vmem:[%s887_s0 + $0x78] sm:$0xff] }
  0x13   :  { %503 = vmatpush.msra.mxu3 %v48_v13  ;;  %94 = vmatpush.msra.mxu0 %v47_v14 }
  0x14   :  { %504 = vmatpush.msra.mxu1 %v47_v14  ;;  %505 = vmatpush.msra.mxu2 %v47_v14 }
  0x15   :  { %506 = vmatpush.msra.mxu3 %v47_v14  ;;  %261 = vperm.xlu2 %534, %v628_v15  }
  0x16   :  { %256 = vperm.xlu1 %533, %v633_v16   ;;  %251 = vperm.xlu0 %532, %v638_v17  }
  0x17   :  { %95 = vmatpush.msra.mxu0 %v46_v18  ;;  %507 = vmatpush.msra.mxu1 %v46_v18 }
  0x18   :  { %508 = vmatpush.msra.mxu2 %v46_v18  ;;  %509 = vmatpush.msra.mxu3 %v46_v18 }
  0x19   :  { %96 = vmatpush.msra.mxu0 %v45_v19  ;;  %510 = vmatpush.msra.mxu1 %v45_v19 }
  0x1a   :  { %511 = vmatpush.msra.mxu2 %v45_v19  ;;  %512 = vmatpush.msra.mxu3 %v45_v19 }
  0x1b   :  { %97 = vmatpush.msra.mxu0 %v44_v20  ;;  %513 = vmatpush.msra.mxu1 %v44_v20 }
  0x1c   :  { %514 = vmatpush.msra.mxu2 %v44_v20  ;;  %515 = vmatpush.msra.mxu3 %v44_v20 }
  0x1d   :  { %98 = vmatpush.msra.mxu0 %v43_v21  ;;  %516 = vmatpush.msra.mxu1 %v43_v21 }
  0x1e   :  { %517 = vmatpush.msra.mxu2 %v43_v21  ;;  %518 = vmatpush.msra.mxu3 %v43_v21  ;;  %v806_v21 = vld [vmem:[%s888_s3] ss:$0 sm:$0xff] }
  0x1f   :  { %276 = vperm.xlu2 %534, %v658_v22   ;;  %271 = vperm.xlu1 %533, %v663_v23  }
  0x20   :  { %266 = vperm.xlu0 %532, %v668_v24   ;;  %99 = vmatpush.msra.mxu0 %v42_v25 }
  0x21   :  { %519 = vmatpush.msra.mxu1 %v42_v25  ;;  %520 = vmatpush.msra.mxu2 %v42_v25 }
  0x22   :  { %521 = vmatpush.msra.mxu3 %v42_v25  ;;  %100 = vmatpush.msra.mxu0 %v41_v26 }
  0x23   :  { %522 = vmatpush.msra.mxu1 %v41_v26  ;;  %523 = vmatpush.msra.mxu2 %v41_v26 }
  0x24   :  { %524 = vmatpush.msra.mxu3 %v41_v26  ;;  %101 = vmatpush.msra.mxu0 %v40_v27 }
  0x25   :  { %525 = vmatpush.msra.mxu1 %v40_v27  ;;  %526 = vmatpush.msra.mxu2 %v40_v27 }
  0x26   :  { %527 = vmatpush.msra.mxu3 %v40_v27  ;;  %102 = vmatpush.msra.mxu0 %v39_v28 }
  0x27   :  { %528 = vmatpush.msra.mxu1 %v39_v28  ;;  %529 = vmatpush.msra.mxu2 %v39_v28 }
  0x28   :  { %530 = vmatpush.msra.mxu3 %v39_v28  ;;  %103 = vmatmul.f32.vlgmr.msra.gmra.mxu0 %v71_v29 }
  0x29   :  { %115 = vmatmul.f32.vlgmr.msra.gmra.mxu1 %v75_v30  ;;  %127 = vmatmul.f32.vlgmr.msra.gmra.mxu2 %v79_v31 }
  0x2a   :  { %139 = vmatmul.f32.vlgmr.msra.gmra.mxu3 %v83_v32  ;;  %291 = vperm.xlu2 %534, %v700_v33  }
  0x2b   :  { %286 = vperm.xlu1 %533, %v705_v34   ;;  %281 = vperm.xlu0 %532, %v710_v35  }
  0x30   :  { %106 = vmatmul.f32.gmra.mxu0 %v72_v36 }
  0x31   :  { %118 = vmatmul.f32.gmra.mxu1 %v76_v37  ;;  %130 = vmatmul.f32.gmra.mxu2 %v80_v38 }
  0x32   :  { %142 = vmatmul.f32.gmra.mxu3 %v84_v39  ;;  %387 = vperm.xlu2 %534, %v368_v40  }
  0x33   :  { %296 = vperm.xlu0 %532, %v733_v41   ;;  %384 = vperm.xlu1 %533, %v367_v42  }
  0x38   :  { %109 = vmatmul.f32.gmra.mxu0 %v73_v43 }
  0x39   :  { %121 = vmatmul.f32.gmra.mxu1 %v77_v44  ;;  %133 = vmatmul.f32.gmra.mxu2 %v81_v45 }
  0x3a   :  { %145 = vmatmul.f32.gmra.mxu3 %v85_v46  ;;  %396 = vperm.xlu2 %534, %v371_v47  }
  0x3b   :  { %390 = vperm.xlu0 %532, %v369_v48   ;;  %393 = vperm.xlu1 %533, %v370_v49  }
  0x40   :  { %112 = vmatmul.f32.gmra.mxu0 %v74_v50 }
  0x41   :  { %124 = vmatmul.f32.gmra.mxu1 %v78_v51  ;;  %136 = vmatmul.f32.gmra.mxu2 %v82_v52 }
  0x42   :  { %148 = vmatmul.f32.gmra.mxu3 %v86_v53  ;;  %405 = vperm.xlu2 %534, %v374_v54  }
  0x43   :  { %399 = vperm.xlu0 %532, %v372_v55   ;;  %402 = vperm.xlu1 %533, %v373_v56  }
  0x4a   :  { %414 = vperm.xlu2 %534, %v377_v57  }
  0x4b   :  { %408 = vperm.xlu0 %532, %v375_v58   ;;  %411 = vperm.xlu1 %533, %v376_v59  }
  0x52   :  { %423 = vperm.xlu2 %534, %v380_v60  }
  0x53   :  { %417 = vperm.xlu0 %532, %v378_v61   ;;  %420 = vperm.xlu1 %533, %v379_v62  }
  0x5b   :  { %426 = vperm.xlu0 %532, %v381_v63   ;;  %429 = vperm.xlu1 %533, %v382_v1  }
  0x5c   :  { %v242_v2 = vpop.permute.xlu2 %241 }
  0x66   :  { %v247_v3 = vpop.permute.xlu2 %246 }
  0x6f   :  { %v262_v4 = vpop.permute.xlu2 %261 }
  0x75   :  { %v232_v5 = vpop.permute.xlu1 %231  ;;  %v222_v6 = vpop.permute.xlu0 %221 }
  0x79   :  { %v789_v7 = vpop.permute.xlu2 %276 }
  0x7e   :  { %v791_v8 = vpop.permute.xlu1 %236 }
  0x7f   :  { %v227_v9 = vpop.permute.xlu0 %226 }
  0x84   :  { %v793_v10 = vpop.permute.xlu2 %291 }
  0x88   :  { %v795_v11 = vpop.permute.xlu1 %256  ;;  %v252_v12 = vpop.permute.xlu0 %251 }
  0x8c   :  { %v388_v13 = vpop.permute.xlu2 %387 }
  0x8d   :  { %vm432_vm2 = vcmp.eq.s32.totalorder %v388_v13, 1 }
  0x91   :  { %v797_v14 = vpop.permute.xlu1 %271 }
  0x92   :  { %v267_v0 = vpop.permute.xlu0 %266 }
  0x94   :  { %v397_v15 = vpop.permute.xlu2 %396 }
  0x95   :  { %vm435_vm0 = vcmp.eq.s32.totalorder %v397_v15, 1 }
  0x9c   :  { %v799_v18 = vpop.permute.xlu2 %405 }
  0x9d   :  { %v287_v16 = vpop.permute.xlu1 %286  ;;  %v282_v17 = vpop.permute.xlu0 %281  ;;  %vm438_vm10 = vcmp.eq.s32.totalorder %v799_v18, 1 }
  0xa4   :  { %v810_v30 = vpop.permute.xlu2 %414 }
  0xa5   :  { %v801_v19 = vpop.permute.xlu0 %296  ;;  %v385_v20 = vpop.permute.xlu1 %384  ;;  %vm441_vm9 = vcmp.eq.s32.totalorder %v810_v30, 1 }
  0xa6   :  { %v104_v22 = vpop.f32.mrf.mxu0  ;;  %v116_v23 = vpop.f32.mrf.mxu1  ;;  %vm431_vm1 = vcmp.eq.s32.totalorder %v385_v20, 1 }
  0xa7   :  { %v299_v24 = vmul.f32 %v222_v6, %v104_v22  ;;  %v303_v25 = vmul.f32 %v242_v2, %v116_v23 }
  0xa9   :  { %v319_v26 = vadd.f32 %v806_v21, %v299_v24  ;;  %v323_v27 = vadd.f32 %v806_v21, %v303_v25 }
  0xab   :  { %v335_v28 = vmax.f32 %v319_v26, 0.0  ;;  %v339_v29 = vmax.f32 %v323_v27, 0.0 }
  0xac   :  { %v128_v31 = vpop.f32.mrf.mxu2  ;;  %v424_v57 = vpop.permute.xlu2 %423 }
  0xad   :  { %v447_v32 = vsel %vm431_vm1, %v335_v28, 0.0  ;;  %v451_v33 = vsel %vm435_vm0, %v339_v29, 0.0  ;;  %v391_v34 = vpop.permute.xlu0 %390  ;;  %v812_v35 = vpop.permute.xlu1 %393  ;;  %v307_v44 = vmul.f32 %v262_v4, %v128_v31  ;;  %vm444_vm4 = vcmp.eq.s32.totalorder %v424_v57, 1 }
  0xae   :  { %463 = vst [vmem:[%s889_s4] sm:$0xff] %v447_v32  ;;  %v140_v36 = vpop.f32.mrf.mxu3  ;;  %v107_v37 = vpop.f32.mrf.mxu0  ;;  %vm433_vm5 = vcmp.eq.s32.totalorder %v391_v34, 1  ;;  %vm434_vm11 = vcmp.eq.s32.totalorder %v812_v35, 1 }
  0xaf   :  { %467 = vst [vmem:[%s889_s4 + $0x20] sm:$0xff] %v451_v33  ;;  %v300_v38 = vmul.f32 %v227_v9, %v107_v37  ;;  %v119_v39 = vpop.f32.mrf.mxu1  ;;  %v327_v58 = vadd.f32 %v806_v21, %v307_v44  ;;  %v311_v4 = vmul.f32 %v282_v17, %v140_v36 }
  0xb0   :  { %v304_v40 = vmul.f32 %v247_v3, %v119_v39 }
  0xb1   :  { %v320_v41 = vadd.f32 %v806_v21, %v300_v38  ;;  %v343_v3 = vmax.f32 %v327_v58, 0.0  ;;  %v331_v28 = vadd.f32 %v806_v21, %v311_v4 }
  0xb2   :  { %v324_v42 = vadd.f32 %v806_v21, %v304_v40 }
  0xb3   :  { %v336_v43 = vmax.f32 %v320_v41, 0.0  ;;  %v347_v30 = vmax.f32 %v331_v28, 0.0 }
  0xb4   :  { %v340_v45 = vmax.f32 %v324_v42, 0.0  ;;  %v131_v46 = vpop.f32.mrf.mxu2 }
  0xb5   :  { %v448_v47 = vsel %vm432_vm2, %v336_v43, 0.0  ;;  %v400_v48 = vpop.permute.xlu0 %399  ;;  %v403_v49 = vpop.permute.xlu1 %402  ;;  %v308_v50 = vmul.f32 %v267_v0, %v131_v46 }
  0xb6   :  { %464 = vst [vmem:[%s889_s4 + $0x8] sm:$0xff] %v448_v47  ;;  %vm436_vm3 = vcmp.eq.s32.totalorder %v400_v48, 1  ;;  %v143_v51 = vpop.f32.mrf.mxu3  ;;  %v110_v52 = vpop.f32.mrf.mxu0  ;;  %vm437_vm6 = vcmp.eq.s32.totalorder %v403_v49, 1 }
  0xb7   :  { %v452_v53 = vsel %vm436_vm3, %v340_v45, 0.0  ;;  %v312_v54 = vmul.f32 %v287_v16, %v143_v51  ;;  %v301_v55 = vmul.f32 %v232_v5, %v110_v52  ;;  %v122_v56 = vpop.f32.mrf.mxu1  ;;  %v328_v60 = vadd.f32 %v806_v21, %v308_v50 }
  0xb8   :  { %468 = vst [vmem:[%s889_s4 + $0x28] sm:$0xff] %v452_v53  ;;  %v305_v59 = vmul.f32 %v252_v12, %v122_v56 }
  0xb9   :  { %v332_v61 = vadd.f32 %v806_v21, %v312_v54  ;;  %v321_v62 = vadd.f32 %v806_v21, %v301_v55  ;;  %v344_v9 = vmax.f32 %v328_v60, 0.0 }
  0xba   :  { %v325_v63 = vadd.f32 %v806_v21, %v305_v59 }
  0xbb   :  { %v348_v1 = vmax.f32 %v332_v61, 0.0  ;;  %v337_v2 = vmax.f32 %v321_v62, 0.0 }
  0xbc   :  { %v341_v5 = vmax.f32 %v325_v63, 0.0  ;;  %v134_v6 = vpop.f32.mrf.mxu2 }
  0xbd   :  { %v460_v13 = vsel %vm444_vm4, %v348_v1, 0.0  ;;  %v449_v12 = vsel %vm433_vm5, %v337_v2, 0.0  ;;  %v409_v0 = vpop.permute.xlu0 %408  ;;  %v412_v15 = vpop.permute.xlu1 %411  ;;  %v309_v16 = vmul.f32 %v797_v14, %v134_v6 }
  0xbe   :  { %476 = vst [vmem:[%s889_s4 + $0x68] sm:$0xff] %v460_v13  ;;  %v453_v20 = vsel %vm437_vm6, %v341_v5, 0.0  ;;  %vm439_vm7 = vcmp.eq.s32.totalorder %v409_v0, 1  ;;  %vm440_vm8 = vcmp.eq.s32.totalorder %v412_v15, 1  ;;  %v146_v22 = vpop.f32.mrf.mxu3  ;;  %v113_v23 = vpop.f32.mrf.mxu0 }
  0xbf   :  { %465 = vst [vmem:[%s889_s4 + $0x10] sm:$0xff] %v449_v12  ;;  %v455_v17 = vsel %vm439_vm7, %v343_v3, 0.0  ;;  %v456_v24 = vsel %vm440_vm8, %v344_v9, 0.0  ;;  %v329_v25 = vadd.f32 %v806_v21, %v309_v16  ;;  %v125_v26 = vpop.f32.mrf.mxu1  ;;  %v302_v14 = vmul.f32 %v791_v8, %v113_v23 }
  0xc0   :  { %469 = vst [vmem:[%s889_s4 + $0x30] sm:$0xff] %v453_v20  ;;  %v306_v27 = vmul.f32 %v795_v11, %v125_v26  ;;  %v313_v36 = vmul.f32 %v793_v10, %v146_v22 }
  0xc1   :  { %471 = vst [vmem:[%s889_s4 + $0x40] sm:$0xff] %v455_v17  ;;  %v345_v29 = vmax.f32 %v329_v25, 0.0  ;;  %v322_v31 = vadd.f32 %v806_v21, %v302_v14 }
  0xc2   :  { %472 = vst [vmem:[%s889_s4 + $0x48] sm:$0xff] %v456_v24  ;;  %v326_v32 = vadd.f32 %v806_v21, %v306_v27  ;;  %v333_v10 = vadd.f32 %v806_v21, %v313_v36 }
  0xc3   :  { %v457_v8 = vsel %vm441_vm9, %v345_v29, 0.0  ;;  %v338_v11 = vmax.f32 %v322_v31, 0.0 }
  0xc4   :  { %473 = vst [vmem:[%s889_s4 + $0x50] sm:$0xff] %v457_v8  ;;  %v342_v33 = vmax.f32 %v326_v32, 0.0  ;;  %v137_v34 = vpop.f32.mrf.mxu2  ;;  %v349_v46 = vmax.f32 %v333_v10, 0.0 }
  0xc5   :  { %v418_v37 = vpop.permute.xlu0 %417  ;;  %v421_v38 = vpop.permute.xlu1 %420  ;;  %v310_v39 = vmul.f32 %v789_v7, %v137_v34  ;;  %v450_v40 = vsel %vm434_vm11, %v338_v11, 0.0 }
  0xc6   :  { %v454_v41 = vsel %vm438_vm10, %v342_v33, 0.0  ;;  %vm443_vm12 = vcmp.eq.s32.totalorder %v421_v38, 1  ;;  %v149_v18 = vpop.f32.mrf.mxu3  ;;  %466 = vst [vmem:[%s889_s4 + $0x18] sm:$0xff] %v450_v40  ;;  %vm442_vm13 = vcmp.eq.s32.totalorder %v418_v37, 1 }
  0xc7   :  { %v459_v42 = vsel %vm443_vm12, %v347_v30, 0.0  ;;  %v330_v43 = vadd.f32 %v806_v21, %v310_v39  ;;  %v314_v35 = vmul.f32 %v801_v19, %v149_v18  ;;  %470 = vst [vmem:[%s889_s4 + $0x38] sm:$0xff] %v454_v41 }
  0xc8   :  { %475 = vst [vmem:[%s889_s4 + $0x60] sm:$0xff] %v459_v42 }
  0xc9   :  { %v346_v7 = vmax.f32 %v330_v43, 0.0  ;;  %v334_v44 = vadd.f32 %v806_v21, %v314_v35 }
  0xcb   :  { %v458_v45 = vsel %vm442_vm13, %v346_v7, 0.0  ;;  %v350_v48 = vmax.f32 %v334_v44, 0.0 }
  0xcc   :  { %474 = vst [vmem:[%s889_s4 + $0x58] sm:$0xff] %v458_v45 }
  0xcd   :  { %v427_v19 = vpop.permute.xlu0 %426  ;;  %v430_v47 = vpop.permute.xlu1 %429 }
  0xce   :  { %vm445_vm14 = vcmp.eq.s32.totalorder %v427_v19, 1  ;;  %vm446_vm15 = vcmp.eq.s32.totalorder %v430_v47, 1 }
  0xcf   :  { %v461_v49 = vsel %vm445_vm14, %v349_v46, 0.0  ;;  %v462_v50 = vsel %vm446_vm15, %v350_v48, 0.0 }
  0xd0   :  { %477 = vst [vmem:[%s889_s4 + $0x70] sm:$0xff] %v461_v49 }
  0xd1   :  { %478 = vst [vmem:[%s889_s4 + $0x78] sm:$0xff] %v462_v50 }

// kernel: gcn_encoder_forward.7
= control target key start
LH: loop header
LB: loop body
LE: loop exit
PB: predicated region body
PF: predicated region fallthrough
CT: control target
= control target key end

     0   :  { %v520_v0 = vmov 0   ;;  %s872_s2 = inlined_call_operand.vmem [shape: f32[128,1], index: 2, kind: input, shape index: {}]   ;;  %s873_s1 = inlined_call_operand.vmem [shape: f32[128,128], index: 1, kind: input, shape index: {}]   ;;  %s874_s0 = inlined_call_operand.vmem [shape: f32[128,128], index: 0, kind: input, shape index: {}]   ;;  %s875_s3 = inlined_call_operand.vmem [shape: f32[1,128], index: 3, kind: input, shape index: {}]   ;;  %s876_s4 = inlined_call_operand.vmem [shape: f32[128,128], index: 4, kind: output, shape index: {}]  }
   0x1   :  { %518 = vset.pattern.permute.xlu2 %v520_v0  ;;  %517 = vset.pattern.permute.xlu1 %v520_v0  ;;  %v551_v1 = vld [vmem:[%s872_s2 + $0x20] sm:$0xff]  ;;  %v556_v2 = vld [vmem:[%s872_s2 + $0x10] sm:$0xff]  ;;  %v54_v4 = vld [vmem:[%s873_s1 + $0x78] sm:$0xff] }
   0x2   :  { %v561_v3 = vld [vmem:[%s872_s2] sm:$0xff]  ;;  %516 = vset.pattern.permute.xlu0 %v520_v0  ;;  %241 = vperm.xlu2 %518, %v551_v1   ;;  %v53_v5 = vld [vmem:[%s873_s1 + $0x70] sm:$0xff]  ;;  %v52_v6 = vld [vmem:[%s873_s1 + $0x68] sm:$0xff]  ;;  %vm339_vm2 = vcmp.gt.f32.partialorder %v551_v1, 0.0  ;;  %vm337_vm3 = vcmp.gt.f32.partialorder %v556_v2, 0.0 }
   0x3   :  { %231 = vperm.xlu1 %517, %v556_v2   ;;  %221 = vperm.xlu0 %516, %v561_v3   ;;  %v51_v7 = vld [vmem:[%s873_s1 + $0x60] sm:$0xff]  ;;  %v582_v8 = vld [vmem:[%s872_s2 + $0x28] sm:$0xff]  ;;  %v587_v9 = vld [vmem:[%s872_s2 + $0x18] sm:$0xff]  ;;  %vm335_vm1 = vcmp.gt.f32.partialorder %v561_v3, 0.0  ;;  %v355_v47 = vsel %vm339_vm2, 1, %v520_v0  ;;  %v353_v48 = vsel %vm337_vm3, 1, %v520_v0 }
   0x4   :  { %87 = vmatpush.msra.mxu0 %v54_v4  ;;  %467 = vmatpush.msra.mxu1 %v54_v4  ;;  %v592_v10 = vld [vmem:[%s872_s2 + $0x8] sm:$0xff]  ;;  %v50_v11 = vld [vmem:[%s873_s1 + $0x58] sm:$0xff]  ;;  %v49_v12 = vld [vmem:[%s873_s1 + $0x50] sm:$0xff]  ;;  %v351_v42 = vsel %vm335_vm1, 1, %v520_v0  ;;  %vm338_vm4 = vcmp.gt.f32.partialorder %v587_v9, 0.0  ;;  %vm340_vm6 = vcmp.gt.f32.partialorder %v582_v8, 0.0 }
   0x5   :  { %468 = vmatpush.msra.mxu2 %v54_v4  ;;  %469 = vmatpush.msra.mxu3 %v54_v4  ;;  %v48_v13 = vld [vmem:[%s873_s1 + $0x48] sm:$0xff]  ;;  %v47_v14 = vld [vmem:[%s873_s1 + $0x40] sm:$0xff]  ;;  %v617_v16 = vld [vmem:[%s872_s2 + $0x38] sm:$0xff]  ;;  %vm336_vm0 = vcmp.gt.f32.partialorder %v592_v10, 0.0  ;;  %v354_v49 = vsel %vm338_vm4, 1, %v520_v0  ;;  %v356_v55 = vsel %vm340_vm6, 1, %v520_v0 }
   0x6   :  { %88 = vmatpush.msra.mxu0 %v53_v5  ;;  %470 = vmatpush.msra.mxu1 %v53_v5  ;;  %v612_v15 = vld [vmem:[%s872_s2 + $0x40] sm:$0xff]  ;;  %v622_v17 = vld [vmem:[%s872_s2 + $0x30] sm:$0xff]  ;;  %v46_v18 = vld [vmem:[%s873_s1 + $0x38] sm:$0xff]  ;;  %v352_v40 = vsel %vm336_vm0, 1, %v520_v0  ;;  %vm342_vm5 = vcmp.gt.f32.partialorder %v617_v16, 0.0 }
   0x7   :  { %471 = vmatpush.msra.mxu2 %v53_v5  ;;  %472 = vmatpush.msra.mxu3 %v53_v5  ;;  %v45_v19 = vld [vmem:[%s873_s1 + $0x30] sm:$0xff]  ;;  %v44_v20 = vld [vmem:[%s873_s1 + $0x28] sm:$0xff]  ;;  %v43_v21 = vld [vmem:[%s873_s1 + $0x20] sm:$0xff]  ;;  %vm341_vm7 = vcmp.gt.f32.partialorder %v622_v17, 0.0  ;;  %v358_v54 = vsel %vm342_vm5, 1, %v520_v0  ;;  %vm343_vm9 = vcmp.gt.f32.partialorder %v612_v15, 0.0 }
   0x8   :  { %89 = vmatpush.msra.mxu0 %v52_v6  ;;  %473 = vmatpush.msra.mxu1 %v52_v6  ;;  %v642_v22 = vld [vmem:[%s872_s2 + $0x58] sm:$0xff]  ;;  %v647_v23 = vld [vmem:[%s872_s2 + $0x50] sm:$0xff]  ;;  %v652_v24 = vld [vmem:[%s872_s2 + $0x48] sm:$0xff]  ;;  %v357_v56 = vsel %vm341_vm7, 1, %v520_v0  ;;  %v359_v58 = vsel %vm343_vm9, 1, %v520_v0 }
   0x9   :  { %474 = vmatpush.msra.mxu2 %v52_v6  ;;  %475 = vmatpush.msra.mxu3 %v52_v6  ;;  %v42_v25 = vld [vmem:[%s873_s1 + $0x18] sm:$0xff]  ;;  %v41_v26 = vld [vmem:[%s873_s1 + $0x10] sm:$0xff]  ;;  %v40_v27 = vld [vmem:[%s873_s1 + $0x8] sm:$0xff]  ;;  %vm345_vm8 = vcmp.gt.f32.partialorder %v647_v23, 0.0  ;;  %vm344_vm10 = vcmp.gt.f32.partialorder %v652_v24, 0.0  ;;  %vm346_vm12 = vcmp.gt.f32.partialorder %v642_v22, 0.0 }
   0xa   :  { %90 = vmatpush.msra.mxu0 %v51_v7  ;;  %476 = vmatpush.msra.mxu1 %v51_v7  ;;  %v39_v28 = vld [vmem:[%s873_s1] sm:$0xff]  ;;  %v684_v33 = vld [vmem:[%s872_s2 + $0x70] sm:$0xff]  ;;  %v689_v34 = vld [vmem:[%s872_s2 + $0x68] sm:$0xff]  ;;  %v361_v57 = vsel %vm345_vm8, 1, %v520_v0  ;;  %v360_v59 = vsel %vm344_vm10, 1, %v520_v0  ;;  %v362_v61 = vsel %vm346_vm12, 1, %v520_v0 }
   0xb   :  { %477 = vmatpush.msra.mxu2 %v51_v7  ;;  %478 = vmatpush.msra.mxu3 %v51_v7  ;;  %v71_v29 = vld [vmem:[%s874_s0] sm:$0xff]  ;;  %v72_v36 = vld [vmem:[%s874_s0 + $0x8] sm:$0xff]  ;;  %v717_v41 = vld [vmem:[%s872_s2 + $0x78] sm:$0xff]  ;;  %vm348_vm11 = vcmp.gt.f32.partialorder %v689_v34, 0.0  ;;  %vm349_vm14 = vcmp.gt.f32.partialorder %v684_v33, 0.0 }
   0xc   :  { %246 = vperm.xlu2 %518, %v582_v8   ;;  %236 = vperm.xlu1 %517, %v587_v9   ;;  %v75_v30 = vld [vmem:[%s874_s0 + $0x20] sm:$0xff]  ;;  %v76_v37 = vld [vmem:[%s874_s0 + $0x28] sm:$0xff]  ;;  %v73_v43 = vld [vmem:[%s874_s0 + $0x10] sm:$0xff]  ;;  %v364_v60 = vsel %vm348_vm11, 1, %v520_v0  ;;  %vm350_vm15 = vcmp.gt.f32.partialorder %v717_v41, 0.0  ;;  %v365_v63 = vsel %vm349_vm14, 1, %v520_v0 }
   0xd   :  { %226 = vperm.xlu0 %516, %v592_v10   ;;  %91 = vmatpush.msra.mxu0 %v50_v11  ;;  %v79_v31 = vld [vmem:[%s874_s0 + $0x40] sm:$0xff]  ;;  %v80_v38 = vld [vmem:[%s874_s0 + $0x48] sm:$0xff]  ;;  %v77_v44 = vld [vmem:[%s874_s0 + $0x30] sm:$0xff]  ;;  %v366_v1 = vsel %vm350_vm15, 1, %v520_v0 }
   0xe   :  { %479 = vmatpush.msra.mxu1 %v50_v11  ;;  %480 = vmatpush.msra.mxu2 %v50_v11  ;;  %v83_v32 = vld [vmem:[%s874_s0 + $0x60] sm:$0xff]  ;;  %v84_v39 = vld [vmem:[%s874_s0 + $0x68] sm:$0xff]  ;;  %v81_v45 = vld [vmem:[%s874_s0 + $0x50] sm:$0xff] }
   0xf   :  { %481 = vmatpush.msra.mxu3 %v50_v11  ;;  %92 = vmatpush.msra.mxu0 %v49_v12  ;;  %v694_v35 = vld [vmem:[%s872_s2 + $0x60] sm:$0xff]  ;;  %v85_v46 = vld [vmem:[%s874_s0 + $0x70] sm:$0xff]  ;;  %v74_v50 = vld [vmem:[%s874_s0 + $0x18] sm:$0xff] }
  0x10   :  { %482 = vmatpush.msra.mxu1 %v49_v12  ;;  %483 = vmatpush.msra.mxu2 %v49_v12  ;;  %v78_v51 = vld [vmem:[%s874_s0 + $0x38] sm:$0xff]  ;;  %vm347_vm13 = vcmp.gt.f32.partialorder %v694_v35, 0.0 }
  0x11   :  { %484 = vmatpush.msra.mxu3 %v49_v12  ;;  %93 = vmatpush.msra.mxu0 %v48_v13  ;;  %v82_v52 = vld [vmem:[%s874_s0 + $0x58] sm:$0xff]  ;;  %v363_v62 = vsel %vm347_vm13, 1, %v520_v0 }
  0x12   :  { %485 = vmatpush.msra.mxu1 %v48_v13  ;;  %486 = vmatpush.msra.mxu2 %v48_v13  ;;  %v86_v53 = vld [vmem:[%s874_s0 + $0x78] sm:$0xff] }
  0x13   :  { %487 = vmatpush.msra.mxu3 %v48_v13  ;;  %94 = vmatpush.msra.mxu0 %v47_v14 }
  0x14   :  { %488 = vmatpush.msra.mxu1 %v47_v14  ;;  %489 = vmatpush.msra.mxu2 %v47_v14 }
  0x15   :  { %490 = vmatpush.msra.mxu3 %v47_v14  ;;  %261 = vperm.xlu2 %518, %v612_v15  }
  0x16   :  { %256 = vperm.xlu1 %517, %v617_v16   ;;  %251 = vperm.xlu0 %516, %v622_v17  }
  0x17   :  { %95 = vmatpush.msra.mxu0 %v46_v18  ;;  %491 = vmatpush.msra.mxu1 %v46_v18 }
  0x18   :  { %492 = vmatpush.msra.mxu2 %v46_v18  ;;  %493 = vmatpush.msra.mxu3 %v46_v18 }
  0x19   :  { %96 = vmatpush.msra.mxu0 %v45_v19  ;;  %494 = vmatpush.msra.mxu1 %v45_v19 }
  0x1a   :  { %495 = vmatpush.msra.mxu2 %v45_v19  ;;  %496 = vmatpush.msra.mxu3 %v45_v19 }
  0x1b   :  { %97 = vmatpush.msra.mxu0 %v44_v20  ;;  %497 = vmatpush.msra.mxu1 %v44_v20 }
  0x1c   :  { %498 = vmatpush.msra.mxu2 %v44_v20  ;;  %499 = vmatpush.msra.mxu3 %v44_v20 }
  0x1d   :  { %98 = vmatpush.msra.mxu0 %v43_v21  ;;  %500 = vmatpush.msra.mxu1 %v43_v21 }
  0x1e   :  { %501 = vmatpush.msra.mxu2 %v43_v21  ;;  %502 = vmatpush.msra.mxu3 %v43_v21  ;;  %v792_v21 = vld [vmem:[%s875_s3] ss:$0 sm:$0xff] }
  0x1f   :  { %276 = vperm.xlu2 %518, %v642_v22   ;;  %271 = vperm.xlu1 %517, %v647_v23  }
  0x20   :  { %266 = vperm.xlu0 %516, %v652_v24   ;;  %99 = vmatpush.msra.mxu0 %v42_v25 }
  0x21   :  { %503 = vmatpush.msra.mxu1 %v42_v25  ;;  %504 = vmatpush.msra.mxu2 %v42_v25 }
  0x22   :  { %505 = vmatpush.msra.mxu3 %v42_v25  ;;  %100 = vmatpush.msra.mxu0 %v41_v26 }
  0x23   :  { %506 = vmatpush.msra.mxu1 %v41_v26  ;;  %507 = vmatpush.msra.mxu2 %v41_v26 }
  0x24   :  { %508 = vmatpush.msra.mxu3 %v41_v26  ;;  %101 = vmatpush.msra.mxu0 %v40_v27 }
  0x25   :  { %509 = vmatpush.msra.mxu1 %v40_v27  ;;  %510 = vmatpush.msra.mxu2 %v40_v27 }
  0x26   :  { %511 = vmatpush.msra.mxu3 %v40_v27  ;;  %102 = vmatpush.msra.mxu0 %v39_v28 }
  0x27   :  { %512 = vmatpush.msra.mxu1 %v39_v28  ;;  %513 = vmatpush.msra.mxu2 %v39_v28 }
  0x28   :  { %514 = vmatpush.msra.mxu3 %v39_v28  ;;  %103 = vmatmul.f32.vlgmr.msra.gmra.mxu0 %v71_v29 }
  0x29   :  { %115 = vmatmul.f32.vlgmr.msra.gmra.mxu1 %v75_v30  ;;  %127 = vmatmul.f32.vlgmr.msra.gmra.mxu2 %v79_v31 }
  0x2a   :  { %139 = vmatmul.f32.vlgmr.msra.gmra.mxu3 %v83_v32  ;;  %291 = vperm.xlu2 %518, %v684_v33  }
  0x2b   :  { %286 = vperm.xlu1 %517, %v689_v34   ;;  %281 = vperm.xlu0 %516, %v694_v35  }
  0x30   :  { %106 = vmatmul.f32.gmra.mxu0 %v72_v36 }
  0x31   :  { %118 = vmatmul.f32.gmra.mxu1 %v76_v37  ;;  %130 = vmatmul.f32.gmra.mxu2 %v80_v38 }
  0x32   :  { %142 = vmatmul.f32.gmra.mxu3 %v84_v39  ;;  %371 = vperm.xlu2 %518, %v352_v40  }
  0x33   :  { %296 = vperm.xlu0 %516, %v717_v41   ;;  %368 = vperm.xlu1 %517, %v351_v42  }
  0x38   :  { %109 = vmatmul.f32.gmra.mxu0 %v73_v43 }
  0x39   :  { %121 = vmatmul.f32.gmra.mxu1 %v77_v44  ;;  %133 = vmatmul.f32.gmra.mxu2 %v81_v45 }
  0x3a   :  { %145 = vmatmul.f32.gmra.mxu3 %v85_v46  ;;  %380 = vperm.xlu2 %518, %v355_v47  }
  0x3b   :  { %374 = vperm.xlu0 %516, %v353_v48   ;;  %377 = vperm.xlu1 %517, %v354_v49  }
  0x40   :  { %112 = vmatmul.f32.gmra.mxu0 %v74_v50 }
  0x41   :  { %124 = vmatmul.f32.gmra.mxu1 %v78_v51  ;;  %136 = vmatmul.f32.gmra.mxu2 %v82_v52 }
  0x42   :  { %148 = vmatmul.f32.gmra.mxu3 %v86_v53  ;;  %389 = vperm.xlu2 %518, %v358_v54  }
  0x43   :  { %383 = vperm.xlu0 %516, %v356_v55   ;;  %386 = vperm.xlu1 %517, %v357_v56  }
  0x4a   :  { %398 = vperm.xlu2 %518, %v361_v57  }
  0x4b   :  { %392 = vperm.xlu0 %516, %v359_v58   ;;  %395 = vperm.xlu1 %517, %v360_v59  }
  0x52   :  { %407 = vperm.xlu2 %518, %v364_v60  }
  0x53   :  { %401 = vperm.xlu0 %516, %v362_v61   ;;  %404 = vperm.xlu1 %517, %v363_v62  }
  0x5b   :  { %410 = vperm.xlu0 %516, %v365_v63   ;;  %413 = vperm.xlu1 %517, %v366_v1  }
  0x5c   :  { %v242_v2 = vpop.permute.xlu2 %241 }
  0x66   :  { %v247_v3 = vpop.permute.xlu2 %246 }
  0x6f   :  { %v262_v4 = vpop.permute.xlu2 %261 }
  0x75   :  { %v232_v5 = vpop.permute.xlu1 %231  ;;  %v222_v6 = vpop.permute.xlu0 %221 }
  0x79   :  { %v773_v7 = vpop.permute.xlu2 %276 }
  0x7e   :  { %v775_v8 = vpop.permute.xlu1 %236 }
  0x7f   :  { %v227_v9 = vpop.permute.xlu0 %226 }
  0x84   :  { %v777_v10 = vpop.permute.xlu2 %291 }
  0x88   :  { %v779_v11 = vpop.permute.xlu1 %256  ;;  %v252_v12 = vpop.permute.xlu0 %251 }
  0x8c   :  { %v372_v13 = vpop.permute.xlu2 %371 }
  0x8d   :  { %vm416_vm2 = vcmp.eq.s32.totalorder %v372_v13, 1 }
  0x91   :  { %v781_v14 = vpop.permute.xlu1 %271 }
  0x92   :  { %v267_v0 = vpop.permute.xlu0 %266 }
  0x94   :  { %v381_v15 = vpop.permute.xlu2 %380 }
  0x95   :  { %vm419_vm0 = vcmp.eq.s32.totalorder %v381_v15, 1 }
  0x9c   :  { %v785_v18 = vpop.permute.xlu2 %389 }
  0x9d   :  { %v287_v16 = vpop.permute.xlu1 %286  ;;  %v783_v17 = vpop.permute.xlu0 %281  ;;  %vm422_vm10 = vcmp.eq.s32.totalorder %v785_v18, 1 }
  0xa4   :  { %v796_v30 = vpop.permute.xlu2 %398 }
  0xa5   :  { %v787_v19 = vpop.permute.xlu0 %296  ;;  %v369_v20 = vpop.permute.xlu1 %368  ;;  %vm425_vm9 = vcmp.eq.s32.totalorder %v796_v30, 1 }
  0xa6   :  { %v104_v22 = vpop.f32.mrf.mxu0  ;;  %v116_v23 = vpop.f32.mrf.mxu1  ;;  %vm415_vm1 = vcmp.eq.s32.totalorder %v369_v20, 1 }
  0xa7   :  { %v299_v24 = vmul.f32 %v222_v6, %v104_v22  ;;  %v303_v25 = vmul.f32 %v242_v2, %v116_v23 }
  0xa9   :  { %v319_v26 = vadd.f32 %v792_v21, %v299_v24  ;;  %v323_v27 = vadd.f32 %v792_v21, %v303_v25 }
  0xab   :  { %v431_v28 = vsel %vm415_vm1, %v319_v26, 0.0  ;;  %v435_v29 = vsel %vm419_vm0, %v323_v27, 0.0 }
  0xac   :  { %447 = vst [vmem:[%s876_s4] sm:$0xff] %v431_v28  ;;  %v128_v31 = vpop.f32.mrf.mxu2  ;;  %v408_v47 = vpop.permute.xlu2 %407 }
  0xad   :  { %451 = vst [vmem:[%s876_s4 + $0x20] sm:$0xff] %v435_v29  ;;  %v375_v32 = vpop.permute.xlu0 %374  ;;  %v804_v33 = vpop.permute.xlu1 %377  ;;  %v307_v53 = vmul.f32 %v262_v4, %v128_v31  ;;  %vm428_vm4 = vcmp.eq.s32.totalorder %v408_v47, 1 }
  0xae   :  { %v140_v34 = vpop.f32.mrf.mxu3  ;;  %v107_v35 = vpop.f32.mrf.mxu0  ;;  %vm417_vm5 = vcmp.eq.s32.totalorder %v375_v32, 1  ;;  %vm418_vm11 = vcmp.eq.s32.totalorder %v804_v33, 1 }
  0xaf   :  { %v300_v36 = vmul.f32 %v227_v9, %v107_v35  ;;  %v119_v37 = vpop.f32.mrf.mxu1  ;;  %v327_v62 = vadd.f32 %v792_v21, %v307_v53  ;;  %v311_v15 = vmul.f32 %v783_v17, %v140_v34 }
  0xb0   :  { %v304_v39 = vmul.f32 %v247_v3, %v119_v37 }
  0xb1   :  { %v320_v38 = vadd.f32 %v792_v21, %v300_v36  ;;  %v331_v23 = vadd.f32 %v792_v21, %v311_v15 }
  0xb2   :  { %v324_v42 = vadd.f32 %v792_v21, %v304_v39 }
  0xb3   :  { %v432_v40 = vsel %vm416_vm2, %v320_v38, 0.0 }
  0xb4   :  { %448 = vst [vmem:[%s876_s4 + $0x8] sm:$0xff] %v432_v40  ;;  %v131_v41 = vpop.f32.mrf.mxu2 }
  0xb5   :  { %v384_v43 = vpop.permute.xlu0 %383  ;;  %v387_v44 = vpop.permute.xlu1 %386  ;;  %v308_v54 = vmul.f32 %v267_v0, %v131_v41 }
  0xb6   :  { %vm420_vm3 = vcmp.eq.s32.totalorder %v384_v43, 1  ;;  %v143_v45 = vpop.f32.mrf.mxu3  ;;  %v110_v46 = vpop.f32.mrf.mxu0  ;;  %vm421_vm6 = vcmp.eq.s32.totalorder %v387_v44, 1 }
  0xb7   :  { %v436_v48 = vsel %vm420_vm3, %v324_v42, 0.0  ;;  %v312_v49 = vmul.f32 %v287_v16, %v143_v45  ;;  %v301_v50 = vmul.f32 %v232_v5, %v110_v46  ;;  %v122_v51 = vpop.f32.mrf.mxu1  ;;  %v328_v63 = vadd.f32 %v792_v21, %v308_v54 }
  0xb8   :  { %452 = vst [vmem:[%s876_s4 + $0x28] sm:$0xff] %v436_v48  ;;  %v305_v52 = vmul.f32 %v252_v12, %v122_v51 }
  0xb9   :  { %v332_v55 = vadd.f32 %v792_v21, %v312_v49  ;;  %v321_v56 = vadd.f32 %v792_v21, %v301_v50 }
  0xba   :  { %v325_v57 = vadd.f32 %v792_v21, %v305_v52 }
  0xbb   :  { %v444_v58 = vsel %vm428_vm4, %v332_v55, 0.0  ;;  %v433_v59 = vsel %vm417_vm5, %v321_v56, 0.0 }
  0xbc   :  { %460 = vst [vmem:[%s876_s4 + $0x68] sm:$0xff] %v444_v58  ;;  %v437_v60 = vsel %vm421_vm6, %v325_v57, 0.0  ;;  %v134_v61 = vpop.f32.mrf.mxu2 }
  0xbd   :  { %449 = vst [vmem:[%s876_s4 + $0x10] sm:$0xff] %v433_v59  ;;  %v393_v1 = vpop.permute.xlu0 %392  ;;  %v396_v2 = vpop.permute.xlu1 %395  ;;  %v309_v3 = vmul.f32 %v781_v14, %v134_v61 }
  0xbe   :  { %453 = vst [vmem:[%s876_s4 + $0x30] sm:$0xff] %v437_v60  ;;  %vm423_vm7 = vcmp.eq.s32.totalorder %v393_v1, 1  ;;  %vm424_vm8 = vcmp.eq.s32.totalorder %v396_v2, 1  ;;  %v146_v4 = vpop.f32.mrf.mxu3  ;;  %v113_v5 = vpop.f32.mrf.mxu0 }
  0xbf   :  { %v439_v6 = vsel %vm423_vm7, %v327_v62, 0.0  ;;  %v440_v9 = vsel %vm424_vm8, %v328_v63, 0.0  ;;  %v329_v12 = vadd.f32 %v792_v21, %v309_v3  ;;  %v125_v13 = vpop.f32.mrf.mxu1  ;;  %v302_v14 = vmul.f32 %v775_v8, %v113_v5 }
  0xc0   :  { %455 = vst [vmem:[%s876_s4 + $0x40] sm:$0xff] %v439_v6  ;;  %v306_v0 = vmul.f32 %v779_v11, %v125_v13  ;;  %v313_v29 = vmul.f32 %v777_v10, %v146_v4 }
  0xc1   :  { %456 = vst [vmem:[%s876_s4 + $0x48] sm:$0xff] %v440_v9  ;;  %v441_v16 = vsel %vm425_vm9, %v329_v12, 0.0  ;;  %v322_v20 = vadd.f32 %v792_v21, %v302_v14 }
  0xc2   :  { %457 = vst [vmem:[%s876_s4 + $0x50] sm:$0xff] %v441_v16  ;;  %v326_v22 = vadd.f32 %v792_v21, %v306_v0 }
  0xc3   :  { %v434_v8 = vsel %vm418_vm11, %v322_v20, 0.0 }
  0xc4   :  { %v438_v11 = vsel %vm422_vm10, %v326_v22, 0.0  ;;  %v137_v17 = vpop.f32.mrf.mxu2  ;;  %450 = vst [vmem:[%s876_s4 + $0x18] sm:$0xff] %v434_v8 }
  0xc5   :  { %v402_v24 = vpop.permute.xlu0 %401  ;;  %v405_v25 = vpop.permute.xlu1 %404  ;;  %v310_v26 = vmul.f32 %v773_v7, %v137_v17  ;;  %454 = vst [vmem:[%s876_s4 + $0x38] sm:$0xff] %v438_v11  ;;  %v333_v7 = vadd.f32 %v792_v21, %v313_v29 }
  0xc6   :  { %vm427_vm12 = vcmp.eq.s32.totalorder %v405_v25, 1  ;;  %v149_v18 = vpop.f32.mrf.mxu3  ;;  %vm426_vm13 = vcmp.eq.s32.totalorder %v402_v24, 1 }
  0xc7   :  { %v443_v27 = vsel %vm427_vm12, %v331_v23, 0.0  ;;  %v330_v28 = vadd.f32 %v792_v21, %v310_v26  ;;  %v314_v31 = vmul.f32 %v787_v19, %v149_v18 }
  0xc8   :  { %459 = vst [vmem:[%s876_s4 + $0x60] sm:$0xff] %v443_v27 }
  0xc9   :  { %v442_v30 = vsel %vm426_vm13, %v330_v28, 0.0  ;;  %v334_v32 = vadd.f32 %v792_v21, %v314_v31 }
  0xca   :  { %458 = vst [vmem:[%s876_s4 + $0x58] sm:$0xff] %v442_v30 }
  0xcd   :  { %v411_v33 = vpop.permute.xlu0 %410  ;;  %v414_v34 = vpop.permute.xlu1 %413 }
  0xce   :  { %vm429_vm14 = vcmp.eq.s32.totalorder %v411_v33, 1  ;;  %vm430_vm15 = vcmp.eq.s32.totalorder %v414_v34, 1 }
  0xcf   :  { %v445_v35 = vsel %vm429_vm14, %v333_v7, 0.0  ;;  %v446_v36 = vsel %vm430_vm15, %v334_v32, 0.0 }
  0xd0   :  { %461 = vst [vmem:[%s876_s4 + $0x70] sm:$0xff] %v445_v35 }
  0xd1   :  { %462 = vst [vmem:[%s876_s4 + $0x78] sm:$0xff] %v446_v36 }

</bundles_post_ra>
